<compile_context>
chip_gen: v5e
topology: v5e:2x2
jax: 0.10.0
libtpu: 0.0.40
codegen_flags: <defaults>
</compile_context>

<pallas_src>
import math
from functools import partial

import jax
import jax.numpy as jnp
from jax.experimental import pallas as pl
from jax.experimental.pallas import tpu as pltpu

EPS = 1e-7  # matches RMSNorm(eps=1e-07)


# ---------------------------------------------------------------------------
# In-kernel helpers (pure jnp, traced into the Pallas body)
# ---------------------------------------------------------------------------
def _rmsnorm(x, gamma):
    # RMS = X / sqrt(eps + mean(X**2, -1)); out = RMS * gamma
    ms = jnp.mean(x * x, axis=-1, keepdims=True)
    return (x / jnp.sqrt(EPS + ms)) * gamma


def _roll_half(t, half):
    # Roll by `half` along the last axis == concat([t2, t1]); with the sign of sin
    # folded into the table (first half negated in the wrapper) this IS
    # rotate_half(t) * sin without any extra VALU negate.
    # TODO(synk): for hd >= 128 use pltpu.roll(t, half, axis=-1) (XLU slot) instead.
    return jnp.concatenate([t[..., half:], t[..., :half]], axis=-1)


# ---------------------------------------------------------------------------
# Pallas kernel: one packed batch tile (TB, S, D) per grid step; fully fused.
# ---------------------------------------------------------------------------
def transformer_block_kernel(x_ref, wqkv_ref, wo_ref, bo_ref, g1_ref, g2_ref,
                             cos_ref, sin_ref, out_ref, o_stage_ref, *, n_heads):
    x = x_ref[...]                          # (TB, S, D) float32
    TB, S, D = x.shape
    H = n_heads
    hd = D // H
    half = hd // 2
    R = TB * S

    g1 = g1_ref[...]                        # (1, D)
    g2 = g2_ref[...]                        # (1, D)

    # ---- norm1 (f32), then a single bf16 activation slab for the projection ----
    xn = _rmsnorm(x, g1)                    # (TB, S, D)
    xb = xn.astype(jnp.bfloat16).reshape(R, D)

    # ---- ONE fused QKV projection: (R, D) @ (D, 3D) -> (R, 3D), f32 accumulate ----
    qkv = jnp.dot(xb, wqkv_ref[...], preferred_element_type=jnp.float32)

    # ---- hoisted broadcasts (RoPE tables, additive causal bias) ----
    cos_b = jnp.broadcast_to(cos_ref[...][None], (TB, S, hd))   # (TB, S, hd)
    sin_b = jnp.broadcast_to(sin_ref[...][None], (TB, S, hd))   # sign-folded sin

    row = jax.lax.broadcasted_iota(jnp.int32, (S, S), 0)
    col = jax.lax.broadcasted_iota(jnp.int32, (S, S), 1)
    bias = jnp.where(row >= col, 0.0, -1e30).astype(jnp.float32)
    bias_b = jnp.broadcast_to(bias[None], (TB, S, S))            # (TB, S, S)

    # ---- per-head attention; each head stages its output into the bf16 slab ----
    for h in range(H):
        c0 = h * hd
        q = qkv[:, c0:c0 + hd].reshape(TB, S, hd)          # 1/sqrt(hd) folded in wq
        k = qkv[:, D + c0:D + c0 + hd].reshape(TB, S, hd)
        v = qkv[:, 2 * D + c0:2 * D + c0 + hd].reshape(TB, S, hd)

        # RoPE: x*cos + rotate_half(x)*sin  (sign of sin pre-folded -> just 2 FMAs)
        qh = (q * cos_b + _roll_half(q, half) * sin_b).astype(jnp.bfloat16)
        kh = (k * cos_b + _roll_half(k, half) * sin_b).astype(jnp.bfloat16)

        # scores: contract last dims directly (no explicit transpose)
        s = jnp.einsum("bqd,bkd->bqk", qh, kh,
                       preferred_element_type=jnp.float32)       # (TB, S, S)
        s = s + bias_b                                            # causal bias

        # manual softmax: exp / reciprocal go to the EUP slot
        m = jnp.max(s, axis=-1, keepdims=True)
        p = jnp.exp(s - m)
        l = jnp.sum(p, axis=-1, keepdims=True)
        p = p * pl.reciprocal(l, approx=True)

        o = jnp.einsum("bqk,bkd->bqd", p.astype(jnp.bfloat16),
                       v.astype(jnp.bfloat16),
                       preferred_element_type=jnp.float32)        # (TB, S, hd)

        # stage this head's output into its column slice of the bf16 slab
        o_stage_ref[:, c0:c0 + hd] = o.reshape(R, hd).astype(jnp.bfloat16)

    # ---- single output projection (K = D), bias, residual, norm2 ----
    attn = jnp.dot(o_stage_ref[...], wo_ref[...],
                   preferred_element_type=jnp.float32)            # (R, D)
    attn = attn + bo_ref[...]
    y = attn.reshape(TB, S, D) + x
    out_ref[...] = _rmsnorm(y, g2).astype(out_ref.dtype)


# ---------------------------------------------------------------------------
# Wrapper: parameter pre-processing + pallas_call
# ---------------------------------------------------------------------------
def _prep_params(params, n_heads):
    D = params["wq"].shape[0]
    hd = D // n_heads
    half = hd // 2
    scale = 1.0 / math.sqrt(hd)

    # fuse Q (with 1/sqrt(hd) folded in), K, V along the output dim -> (D, 3D)
    wqkv = jnp.concatenate([params["wq"] * scale, params["wk"], params["wv"]],
                           axis=1)

    # sign-fold rotate_half into the sin table: first half negated, so the kernel
    # only needs a roll + FMA (no negate, no pre-rotated weight copies).
    sin = params["sin"]
    sin_folded = jnp.concatenate([-sin[:, :half], sin[:, half:]], axis=1)

    bf, f32 = jnp.bfloat16, jnp.float32
    return dict(
        wqkv=wqkv.astype(bf),
        wo=params["wo"].astype(bf),
        bo=params["bo"].astype(f32),
        g1=params["g1"].astype(f32), g2=params["g2"].astype(f32),
        cos=params["cos"].astype(f32), sin=sin_folded.astype(f32),
    )


def _pick_batch_tile(B, S, target_rows=512, max_rows=2048):
    # Pack batch elements per grid step toward an MXU-friendly row count, but keep
    # >= 2 grid steps when B >= 2 so the "parallel" axis can shard across v7x's
    # two TensorCores.
    cap = B if B < 2 else max(1, B // 2)
    tb = 1
    for cand in range(1, cap + 1):
        if B % cand == 0 and cand * S <= max_rows:
            tb = cand
            if cand * S >= target_rows:
                break
    return tb


def _vmem_limit_bytes():
    # Size the scoped-VMEM cap to the chip: ~75% of physical VMEM
    # (v5e/v6e 128 MiB -> ~96 MiB, v7x 64 MiB -> 48 MiB). Safe fallback: 48 MiB.
    try:
        cap = int(pltpu.get_tpu_info().vmem_capacity_bytes)
        if cap > 0:
            return min(cap * 3 // 4, 112 * 1024 * 1024)
    except Exception:
        pass
    return 48 * 1024 * 1024


def _make_call(B, S, D, H, TB, out_dtype, single_buffer_weights):
    hd = D // H

    def fixed(shape):
        n = len(shape)
        idx = lambda b, _n=n: (0,) * _n
        if single_buffer_weights:
            # constant block index -> no need for double buffering (halves weight VMEM)
            return pl.BlockSpec(shape, idx, pipeline_mode=pl.Buffered(1))
        return pl.BlockSpec(shape, idx)

    kernel = partial(transformer_block_kernel, n_heads=H)
    return pl.pallas_call(
        kernel,
        out_shape=jax.ShapeDtypeStruct((B, S, D), out_dtype),
        grid=(B // TB,),
        in_specs=[
            pl.BlockSpec((TB, S, D), lambda b: (b, 0, 0)),   # x (packed batch tile)
            fixed((D, 3 * D)),                               # fused wq|wk|wv
            fixed((D, D)),                                   # wo
            fixed((1, D)),                                   # bo
            fixed((1, D)),                                   # gamma1
            fixed((1, D)),                                   # gamma2
            fixed((S, hd)),                                  # cos
            fixed((S, hd)),                                  # sin (sign-folded)
        ],
        out_specs=pl.BlockSpec((TB, S, D), lambda b: (b, 0, 0)),
        scratch_shapes=[pltpu.VMEM((TB * S, D), jnp.bfloat16)],   # per-head o slab
        compiler_params=pltpu.CompilerParams(
            dimension_semantics=("parallel",),                # shard batch across TCs
            vmem_limit_bytes=_vmem_limit_bytes(),
        ),
    )


def transformer_block(x, params, n_heads):
    B, S, D = x.shape
    H = n_heads
    hd = D // H
    assert D % H == 0 and hd % 2 == 0

    p = _prep_params(params, n_heads)
    TB = _pick_batch_tile(B, S)
    args = (x, p["wqkv"], p["wo"], p["bo"], p["g1"], p["g2"], p["cos"], p["sin"])

    # Prefer single-buffered constant-index weight inputs; fall back to default
    # double buffering if this Pallas build rejects pipeline_mode=pl.Buffered(1).
    last_err = None
    for single_buf in (True, False):
        try:
            call = _make_call(B, S, D, H, TB, x.dtype, single_buf)
            return jax.block_until_ready(call(*args))
        except Exception as e:  # noqa: BLE001 — retry with the safe configuration
            last_err = e
    raise last_err


# ---------------------------------------------------------------------------
# RoPE table (llama2 convention, theta=10000) — plain-JAX glue
# ---------------------------------------------------------------------------
def get_rope_params(seq_len, head_dim, theta=10000.0):
    inv_freq = 1.0 / (theta ** (jnp.arange(0, head_dim, 2, dtype=jnp.float32) / head_dim))
    pos = jnp.arange(seq_len, dtype=jnp.float32)
    angles = pos[:, None] * inv_freq[None, :]
    angles = jnp.concatenate([angles, angles], axis=1)   # (seq_len, head_dim)
    return jnp.cos(angles), jnp.sin(angles)


# ---------------------------------------------------------------------------
# Pure-JAX reference (mirrors the PyTorch code) for a sanity check
# ---------------------------------------------------------------------------
def reference(x, params, n_heads):
    B, S, D = x.shape
    hd = D // n_heads

    def rms(t, g):
        return t / jnp.sqrt(EPS + jnp.mean(t * t, axis=-1, keepdims=True)) * g.reshape(-1)

    xn = rms(x, params["g1"])
    q = xn @ params["wq"]
    k = xn @ params["wk"]
    v = xn @ params["wv"]

    def split(t):
        return t.reshape(B, S, n_heads, hd).transpose(0, 2, 1, 3)

    q, k, v = split(q), split(k), split(v)
    cos = params["cos"][None, None]
    sin = params["sin"][None, None]

    def rope(t):
        t1, t2 = t[..., : hd // 2], t[..., hd // 2:]
        rot = jnp.concatenate([-t2, t1], axis=-1)
        return t * cos + rot * sin

    q, k = rope(q), rope(k)
    s = jnp.einsum("bhqd,bhkd->bhqk", q, k) / math.sqrt(hd)
    mask = jnp.tril(jnp.ones((S, S), dtype=bool))
    s = jnp.where(mask, s, -jnp.inf)
    p = jax.nn.softmax(s, axis=-1)
    o = jnp.einsum("bhqk,bhkd->bhqd", p, v)
    o = o.transpose(0, 2, 1, 3).reshape(B, S, D)
    o = o @ params["wo"] + params["bo"].reshape(-1)
    x = o + x
    return rms(x, params["g2"])


if __name__ == "__main__":
    B, S, D, n_heads = 2, 8, 32, 4          # batch, seq, emb_dim, n_heads
    hd = D // n_heads

    key = jax.random.PRNGKey(0)
    kx, kq, kk, kv, ko, kb = jax.random.split(key, 6)

    x = jax.random.normal(kx, (B, S, D), dtype=jnp.float32)
    cos, sin = get_rope_params(S, hd)
    params = {
        "wq": 0.02 * jax.random.normal(kq, (D, D), dtype=jnp.float32),
        "wk": 0.02 * jax.random.normal(kk, (D, D), dtype=jnp.float32),
        "wv": 0.02 * jax.random.normal(kv, (D, D), dtype=jnp.float32),
        "wo": 0.02 * jax.random.normal(ko, (D, D), dtype=jnp.float32),
        "bo": 0.02 * jax.random.normal(kb, (1, D), dtype=jnp.float32),
        "g1": jnp.ones((1, D), dtype=jnp.float32),   # RMSNorm gamma = ones
        "g2": jnp.ones((1, D), dtype=jnp.float32),
        "cos": cos,
        "sin": sin,
    }

    out = transformer_block(x, params, n_heads)
    out = jax.block_until_ready(out)

    ref = reference(x, params, n_heads)
    assert out.shape == (B, S, D)
    max_err = float(jnp.max(jnp.abs(out - ref)))
    assert jnp.allclose(out, ref, atol=2e-2, rtol=2e-2), f"kernel/reference mismatch ({max_err})"
    print("KERNEL_OK")
</pallas_src>

<mosaic_0001>
module attributes {stable_mosaic.version = 11 : i64} {
  func.func @transformer_block_kernel(%arg0: i32, %arg1: memref<1x8x32xf32, #tpu.memory_space<vmem>>, %arg2: memref<32x96xbf16, #tpu.memory_space<vmem>>, %arg3: memref<32x32xbf16, #tpu.memory_space<vmem>>, %arg4: memref<1x32xf32, #tpu.memory_space<vmem>>, %arg5: memref<1x32xf32, #tpu.memory_space<vmem>>, %arg6: memref<1x32xf32, #tpu.memory_space<vmem>>, %arg7: memref<8x8xf32, #tpu.memory_space<vmem>>, %arg8: memref<8x8xf32, #tpu.memory_space<vmem>>, %arg9: memref<1x8x32xf32, #tpu.memory_space<vmem>>, %arg10: memref<8x32xbf16, #tpu.memory_space<vmem>>) attributes {dimension_semantics = [#tpu.dimension_semantics<parallel>], iteration_bounds = array<i64: 2>, scalar_prefetch = 0 : i64, scratch_operands = 1 : i64, tpu.core_type = #tpu.core_type<tc>, window_params = [{transform_indices = @transform_0, window_bounds = array<i64: 1, 8, 32>}, {pipeline_mode = #tpu.pipeline_mode<synchronous>, transform_indices = @transform_1, window_bounds = array<i64: 32, 96>}, {pipeline_mode = #tpu.pipeline_mode<synchronous>, transform_indices = @transform_2, window_bounds = array<i64: 32, 32>}, {pipeline_mode = #tpu.pipeline_mode<synchronous>, transform_indices = @transform_3, window_bounds = array<i64: 1, 32>}, {pipeline_mode = #tpu.pipeline_mode<synchronous>, transform_indices = @transform_4, window_bounds = array<i64: 1, 32>}, {pipeline_mode = #tpu.pipeline_mode<synchronous>, transform_indices = @transform_5, window_bounds = array<i64: 1, 32>}, {pipeline_mode = #tpu.pipeline_mode<synchronous>, transform_indices = @transform_6, window_bounds = array<i64: 8, 8>}, {pipeline_mode = #tpu.pipeline_mode<synchronous>, transform_indices = @transform_7, window_bounds = array<i64: 8, 8>}, {transform_indices = @transform_8, window_bounds = array<i64: 1, 8, 32>}]} {
    %c0 = arith.constant 0 : index
    %c0_0 = arith.constant 0 : index
    %c0_1 = arith.constant 0 : index
    %0 = vector.load %arg1[%c0, %c0_0, %c0_1] : memref<1x8x32xf32, #tpu.memory_space<vmem>>, vector<1x8x32xf32>
    %c0_2 = arith.constant 0 : index
    %c0_3 = arith.constant 0 : index
    %1 = vector.load %arg5[%c0_2, %c0_3] : memref<1x32xf32, #tpu.memory_space<vmem>>, vector<1x32xf32>
    %c0_4 = arith.constant 0 : index
    %c0_5 = arith.constant 0 : index
    %2 = vector.load %arg6[%c0_4, %c0_5] : memref<1x32xf32, #tpu.memory_space<vmem>>, vector<1x32xf32>
    %3 = arith.mulf %0, %0 : vector<1x8x32xf32>
    %cst = arith.constant dense<0.000000e+00> : vector<1x8xf32>
    %4 = vector.multi_reduction <add>, %3, %cst [2] : vector<1x8x32xf32> to vector<1x8xf32>
    %5 = vector.shape_cast %4 : vector<1x8xf32> to vector<1x8x1xf32>
    %cst_6 = arith.constant 3.200000e+01 : f32
    %6 = vector.broadcast %cst_6 : f32 to vector<1x8x1xf32>
    %7 = arith.divf %5, %6 : vector<1x8x1xf32>
    %cst_7 = arith.constant 1.000000e-07 : f32
    %8 = vector.broadcast %cst_7 : f32 to vector<1x8x1xf32>
    %9 = arith.addf %8, %7 : vector<1x8x1xf32>
    %10 = math.sqrt %9 : vector<1x8x1xf32>
    %11 = vector.broadcast %10 : vector<1x8x1xf32> to vector<1x8x32xf32>
    %12 = arith.divf %0, %11 : vector<1x8x32xf32>
    %13 = vector.shape_cast %1 : vector<1x32xf32> to vector<1x1x32xf32>
    %14 = vector.broadcast %13 : vector<1x1x32xf32> to vector<1x8x32xf32>
    %15 = arith.mulf %12, %14 : vector<1x8x32xf32>
    %16 = arith.truncf %15 : vector<1x8x32xf32> to vector<1x8x32xbf16>
    %17 = vector.shape_cast %16 : vector<1x8x32xbf16> to vector<8x32xbf16>
    %c0_8 = arith.constant 0 : index
    %c0_9 = arith.constant 0 : index
    %18 = vector.load %arg2[%c0_8, %c0_9] : memref<32x96xbf16, #tpu.memory_space<vmem>>, vector<32x96xbf16>
    %cst_10 = arith.constant dense<0.000000e+00> : vector<8x96xf32>
    %19 = tpu.matmul %17, %18, %cst_10 {dimension_numbers = #tpu.dot_dimension_numbers<[1], [0], [0], [1], [0, 0, 1, 1], [], []>} : vector<8x32xbf16>, vector<32x96xbf16>, vector<8x96xf32> -> vector<8x96xf32>
    %c0_11 = arith.constant 0 : index
    %c0_12 = arith.constant 0 : index
    %20 = vector.load %arg7[%c0_11, %c0_12] : memref<8x8xf32, #tpu.memory_space<vmem>>, vector<8x8xf32>
    %21 = vector.shape_cast %20 : vector<8x8xf32> to vector<1x8x8xf32>
    %c0_13 = arith.constant 0 : index
    %c0_14 = arith.constant 0 : index
    %22 = vector.load %arg8[%c0_13, %c0_14] : memref<8x8xf32, #tpu.memory_space<vmem>>, vector<8x8xf32>
    %23 = vector.shape_cast %22 : vector<8x8xf32> to vector<1x8x8xf32>
    %24 = tpu.iota {dimensions = array<i32: 0>} : vector<8x8xi32>
    %25 = tpu.iota {dimensions = array<i32: 1>} : vector<8x8xi32>
    %26 = arith.cmpi sge, %24, %25 : vector<8x8xi32>
    %cst_15 = arith.constant 0.000000e+00 : f32
    %cst_16 = arith.constant -1.000000e+30 : f32
    %27 = vector.broadcast %cst_15 : f32 to vector<8x8xf32>
    %28 = vector.broadcast %cst_16 : f32 to vector<8x8xf32>
    %29 = arith.select %26, %27, %28 : vector<8x8xi1>, vector<8x8xf32>
    %30 = vector.shape_cast %29 : vector<8x8xf32> to vector<1x8x8xf32>
    %31 = vector.extract_strided_slice %19 {offsets = [0, 0], sizes = [8, 8], strides = [1, 1]} : vector<8x96xf32> to vector<8x8xf32>
    %32 = vector.shape_cast %31 : vector<8x8xf32> to vector<1x8x8xf32>
    %33 = vector.extract_strided_slice %19 {offsets = [0, 32], sizes = [8, 8], strides = [1, 1]} : vector<8x96xf32> to vector<8x8xf32>
    %34 = vector.shape_cast %33 : vector<8x8xf32> to vector<1x8x8xf32>
    %35 = vector.extract_strided_slice %19 {offsets = [0, 64], sizes = [8, 8], strides = [1, 1]} : vector<8x96xf32> to vector<8x8xf32>
    %36 = vector.shape_cast %35 : vector<8x8xf32> to vector<1x8x8xf32>
    %37 = arith.mulf %32, %21 : vector<1x8x8xf32>
    %38 = vector.extract_strided_slice %32 {offsets = [0, 0, 4], sizes = [1, 8, 4], strides = [1, 1, 1]} : vector<1x8x8xf32> to vector<1x8x4xf32>
    %39 = vector.extract_strided_slice %32 {offsets = [0, 0, 0], sizes = [1, 8, 4], strides = [1, 1, 1]} : vector<1x8x8xf32> to vector<1x8x4xf32>
    %40 = tpu.concatenate %38, %39 in 2 : vector<1x8x4xf32>, vector<1x8x4xf32> -> vector<1x8x8xf32>
    %41 = arith.mulf %40, %23 : vector<1x8x8xf32>
    %42 = arith.addf %37, %41 : vector<1x8x8xf32>
    %43 = arith.truncf %42 : vector<1x8x8xf32> to vector<1x8x8xbf16>
    %44 = arith.mulf %34, %21 : vector<1x8x8xf32>
    %45 = vector.extract_strided_slice %34 {offsets = [0, 0, 4], sizes = [1, 8, 4], strides = [1, 1, 1]} : vector<1x8x8xf32> to vector<1x8x4xf32>
    %46 = vector.extract_strided_slice %34 {offsets = [0, 0, 0], sizes = [1, 8, 4], strides = [1, 1, 1]} : vector<1x8x8xf32> to vector<1x8x4xf32>
    %47 = tpu.concatenate %45, %46 in 2 : vector<1x8x4xf32>, vector<1x8x4xf32> -> vector<1x8x8xf32>
    %48 = arith.mulf %47, %23 : vector<1x8x8xf32>
    %49 = arith.addf %44, %48 : vector<1x8x8xf32>
    %50 = arith.truncf %49 : vector<1x8x8xf32> to vector<1x8x8xbf16>
    "tpu.trace_start"() <{level = 10 : i32, message = "bqd,bkd->bqk"}> : () -> ()
    %cst_17 = arith.constant dense<0.000000e+00> : vector<1x8x8xf32>
    %51 = tpu.matmul %43, %50, %cst_17 {dimension_numbers = #tpu.dot_dimension_numbers<[2], [2], [1], [1], [0, 0, 0, 1, 1, 1], [0], [0]>} : vector<1x8x8xbf16>, vector<1x8x8xbf16>, vector<1x8x8xf32> -> vector<1x8x8xf32>
    "tpu.trace_stop"() : () -> ()
    %52 = arith.addf %51, %30 : vector<1x8x8xf32>
    %cst_18 = arith.constant dense<0xFF800000> : vector<1x8xf32>
    %53 = vector.multi_reduction <maximumf>, %52, %cst_18 [2] : vector<1x8x8xf32> to vector<1x8xf32>
    %54 = vector.shape_cast %53 : vector<1x8xf32> to vector<1x8x1xf32>
    %55 = vector.broadcast %54 : vector<1x8x1xf32> to vector<1x8x8xf32>
    %56 = arith.subf %52, %55 : vector<1x8x8xf32>
    %57 = math.exp %56 : vector<1x8x8xf32>
    %cst_19 = arith.constant dense<0.000000e+00> : vector<1x8xf32>
    %58 = vector.multi_reduction <add>, %57, %cst_19 [2] : vector<1x8x8xf32> to vector<1x8xf32>
    %59 = vector.shape_cast %58 : vector<1x8xf32> to vector<1x8x1xf32>
    %60 = tpu.reciprocal %59 {approx = true} : vector<1x8x1xf32> -> vector<1x8x1xf32>
    %61 = vector.broadcast %60 : vector<1x8x1xf32> to vector<1x8x8xf32>
    %62 = arith.mulf %57, %61 : vector<1x8x8xf32>
    %63 = arith.truncf %62 : vector<1x8x8xf32> to vector<1x8x8xbf16>
    %64 = arith.truncf %36 : vector<1x8x8xf32> to vector<1x8x8xbf16>
    "tpu.trace_start"() <{level = 10 : i32, message = "bqk,bkd->bqd"}> : () -> ()
    %cst_20 = arith.constant dense<0.000000e+00> : vector<1x8x8xf32>
    %65 = tpu.matmul %63, %64, %cst_20 {dimension_numbers = #tpu.dot_dimension_numbers<[2], [1], [1], [2], [0, 0, 0, 1, 1, 2], [0], [0]>} : vector<1x8x8xbf16>, vector<1x8x8xbf16>, vector<1x8x8xf32> -> vector<1x8x8xf32>
    "tpu.trace_stop"() : () -> ()
    %66 = vector.shape_cast %65 : vector<1x8x8xf32> to vector<8x8xf32>
    %67 = arith.truncf %66 : vector<8x8xf32> to vector<8x8xbf16>
    %c0_21 = arith.constant 0 : index
    %c0_22 = arith.constant 0 : index
    %68 = vector.load %arg10[%c0_21, %c0_22] : memref<8x32xbf16, #tpu.memory_space<vmem>>, vector<8x8xbf16>
    tpu.vector_store %arg10[%c0_21, %c0_22], %67 {strides = array<i32>} : memref<8x32xbf16, #tpu.memory_space<vmem>>, vector<8x8xbf16>,
    %69 = vector.extract_strided_slice %19 {offsets = [0, 8], sizes = [8, 8], strides = [1, 1]} : vector<8x96xf32> to vector<8x8xf32>
    %70 = vector.shape_cast %69 : vector<8x8xf32> to vector<1x8x8xf32>
    %71 = vector.extract_strided_slice %19 {offsets = [0, 40], sizes = [8, 8], strides = [1, 1]} : vector<8x96xf32> to vector<8x8xf32>
    %72 = vector.shape_cast %71 : vector<8x8xf32> to vector<1x8x8xf32>
    %73 = vector.extract_strided_slice %19 {offsets = [0, 72], sizes = [8, 8], strides = [1, 1]} : vector<8x96xf32> to vector<8x8xf32>
    %74 = vector.shape_cast %73 : vector<8x8xf32> to vector<1x8x8xf32>
    %75 = arith.mulf %70, %21 : vector<1x8x8xf32>
    %76 = vector.extract_strided_slice %70 {offsets = [0, 0, 4], sizes = [1, 8, 4], strides = [1, 1, 1]} : vector<1x8x8xf32> to vector<1x8x4xf32>
    %77 = vector.extract_strided_slice %70 {offsets = [0, 0, 0], sizes = [1, 8, 4], strides = [1, 1, 1]} : vector<1x8x8xf32> to vector<1x8x4xf32>
    %78 = tpu.concatenate %76, %77 in 2 : vector<1x8x4xf32>, vector<1x8x4xf32> -> vector<1x8x8xf32>
    %79 = arith.mulf %78, %23 : vector<1x8x8xf32>
    %80 = arith.addf %75, %79 : vector<1x8x8xf32>
    %81 = arith.truncf %80 : vector<1x8x8xf32> to vector<1x8x8xbf16>
    %82 = arith.mulf %72, %21 : vector<1x8x8xf32>
    %83 = vector.extract_strided_slice %72 {offsets = [0, 0, 4], sizes = [1, 8, 4], strides = [1, 1, 1]} : vector<1x8x8xf32> to vector<1x8x4xf32>
    %84 = vector.extract_strided_slice %72 {offsets = [0, 0, 0], sizes = [1, 8, 4], strides = [1, 1, 1]} : vector<1x8x8xf32> to vector<1x8x4xf32>
    %85 = tpu.concatenate %83, %84 in 2 : vector<1x8x4xf32>, vector<1x8x4xf32> -> vector<1x8x8xf32>
    %86 = arith.mulf %85, %23 : vector<1x8x8xf32>
    %87 = arith.addf %82, %86 : vector<1x8x8xf32>
    %88 = arith.truncf %87 : vector<1x8x8xf32> to vector<1x8x8xbf16>
    "tpu.trace_start"() <{level = 10 : i32, message = "bqd,bkd->bqk"}> : () -> ()
    %cst_23 = arith.constant dense<0.000000e+00> : vector<1x8x8xf32>
    %89 = tpu.matmul %81, %88, %cst_23 {dimension_numbers = #tpu.dot_dimension_numbers<[2], [2], [1], [1], [0, 0, 0, 1, 1, 1], [0], [0]>} : vector<1x8x8xbf16>, vector<1x8x8xbf16>, vector<1x8x8xf32> -> vector<1x8x8xf32>
    "tpu.trace_stop"() : () -> ()
    %90 = arith.addf %89, %30 : vector<1x8x8xf32>
    %cst_24 = arith.constant dense<0xFF800000> : vector<1x8xf32>
    %91 = vector.multi_reduction <maximumf>, %90, %cst_24 [2] : vector<1x8x8xf32> to vector<1x8xf32>
    %92 = vector.shape_cast %91 : vector<1x8xf32> to vector<1x8x1xf32>
    %93 = vector.broadcast %92 : vector<1x8x1xf32> to vector<1x8x8xf32>
    %94 = arith.subf %90, %93 : vector<1x8x8xf32>
    %95 = math.exp %94 : vector<1x8x8xf32>
    %cst_25 = arith.constant dense<0.000000e+00> : vector<1x8xf32>
    %96 = vector.multi_reduction <add>, %95, %cst_25 [2] : vector<1x8x8xf32> to vector<1x8xf32>
    %97 = vector.shape_cast %96 : vector<1x8xf32> to vector<1x8x1xf32>
    %98 = tpu.reciprocal %97 {approx = true} : vector<1x8x1xf32> -> vector<1x8x1xf32>
    %99 = vector.broadcast %98 : vector<1x8x1xf32> to vector<1x8x8xf32>
    %100 = arith.mulf %95, %99 : vector<1x8x8xf32>
    %101 = arith.truncf %100 : vector<1x8x8xf32> to vector<1x8x8xbf16>
    %102 = arith.truncf %74 : vector<1x8x8xf32> to vector<1x8x8xbf16>
    "tpu.trace_start"() <{level = 10 : i32, message = "bqk,bkd->bqd"}> : () -> ()
    %cst_26 = arith.constant dense<0.000000e+00> : vector<1x8x8xf32>
    %103 = tpu.matmul %101, %102, %cst_26 {dimension_numbers = #tpu.dot_dimension_numbers<[2], [1], [1], [2], [0, 0, 0, 1, 1, 2], [0], [0]>} : vector<1x8x8xbf16>, vector<1x8x8xbf16>, vector<1x8x8xf32> -> vector<1x8x8xf32>
    "tpu.trace_stop"() : () -> ()
    %104 = vector.shape_cast %103 : vector<1x8x8xf32> to vector<8x8xf32>
    %105 = arith.truncf %104 : vector<8x8xf32> to vector<8x8xbf16>
    %c0_27 = arith.constant 0 : index
    %c8 = arith.constant 8 : index
    %106 = vector.load %arg10[%c0_27, %c8] : memref<8x32xbf16, #tpu.memory_space<vmem>>, vector<8x8xbf16>
    tpu.vector_store %arg10[%c0_27, %c8], %105 {strides = array<i32>} : memref<8x32xbf16, #tpu.memory_space<vmem>>, vector<8x8xbf16>,
    %107 = vector.extract_strided_slice %19 {offsets = [0, 16], sizes = [8, 8], strides = [1, 1]} : vector<8x96xf32> to vector<8x8xf32>
    %108 = vector.shape_cast %107 : vector<8x8xf32> to vector<1x8x8xf32>
    %109 = vector.extract_strided_slice %19 {offsets = [0, 48], sizes = [8, 8], strides = [1, 1]} : vector<8x96xf32> to vector<8x8xf32>
    %110 = vector.shape_cast %109 : vector<8x8xf32> to vector<1x8x8xf32>
    %111 = vector.extract_strided_slice %19 {offsets = [0, 80], sizes = [8, 8], strides = [1, 1]} : vector<8x96xf32> to vector<8x8xf32>
    %112 = vector.shape_cast %111 : vector<8x8xf32> to vector<1x8x8xf32>
    %113 = arith.mulf %108, %21 : vector<1x8x8xf32>
    %114 = vector.extract_strided_slice %108 {offsets = [0, 0, 4], sizes = [1, 8, 4], strides = [1, 1, 1]} : vector<1x8x8xf32> to vector<1x8x4xf32>
    %115 = vector.extract_strided_slice %108 {offsets = [0, 0, 0], sizes = [1, 8, 4], strides = [1, 1, 1]} : vector<1x8x8xf32> to vector<1x8x4xf32>
    %116 = tpu.concatenate %114, %115 in 2 : vector<1x8x4xf32>, vector<1x8x4xf32> -> vector<1x8x8xf32>
    %117 = arith.mulf %116, %23 : vector<1x8x8xf32>
    %118 = arith.addf %113, %117 : vector<1x8x8xf32>
    %119 = arith.truncf %118 : vector<1x8x8xf32> to vector<1x8x8xbf16>
    %120 = arith.mulf %110, %21 : vector<1x8x8xf32>
    %121 = vector.extract_strided_slice %110 {offsets = [0, 0, 4], sizes = [1, 8, 4], strides = [1, 1, 1]} : vector<1x8x8xf32> to vector<1x8x4xf32>
    %122 = vector.extract_strided_slice %110 {offsets = [0, 0, 0], sizes = [1, 8, 4], strides = [1, 1, 1]} : vector<1x8x8xf32> to vector<1x8x4xf32>
    %123 = tpu.concatenate %121, %122 in 2 : vector<1x8x4xf32>, vector<1x8x4xf32> -> vector<1x8x8xf32>
    %124 = arith.mulf %123, %23 : vector<1x8x8xf32>
    %125 = arith.addf %120, %124 : vector<1x8x8xf32>
    %126 = arith.truncf %125 : vector<1x8x8xf32> to vector<1x8x8xbf16>
    "tpu.trace_start"() <{level = 10 : i32, message = "bqd,bkd->bqk"}> : () -> ()
    %cst_28 = arith.constant dense<0.000000e+00> : vector<1x8x8xf32>
    %127 = tpu.matmul %119, %126, %cst_28 {dimension_numbers = #tpu.dot_dimension_numbers<[2], [2], [1], [1], [0, 0, 0, 1, 1, 1], [0], [0]>} : vector<1x8x8xbf16>, vector<1x8x8xbf16>, vector<1x8x8xf32> -> vector<1x8x8xf32>
    "tpu.trace_stop"() : () -> ()
    %128 = arith.addf %127, %30 : vector<1x8x8xf32>
    %cst_29 = arith.constant dense<0xFF800000> : vector<1x8xf32>
    %129 = vector.multi_reduction <maximumf>, %128, %cst_29 [2] : vector<1x8x8xf32> to vector<1x8xf32>
    %130 = vector.shape_cast %129 : vector<1x8xf32> to vector<1x8x1xf32>
    %131 = vector.broadcast %130 : vector<1x8x1xf32> to vector<1x8x8xf32>
    %132 = arith.subf %128, %131 : vector<1x8x8xf32>
    %133 = math.exp %132 : vector<1x8x8xf32>
    %cst_30 = arith.constant dense<0.000000e+00> : vector<1x8xf32>
    %134 = vector.multi_reduction <add>, %133, %cst_30 [2] : vector<1x8x8xf32> to vector<1x8xf32>
    %135 = vector.shape_cast %134 : vector<1x8xf32> to vector<1x8x1xf32>
    %136 = tpu.reciprocal %135 {approx = true} : vector<1x8x1xf32> -> vector<1x8x1xf32>
    %137 = vector.broadcast %136 : vector<1x8x1xf32> to vector<1x8x8xf32>
    %138 = arith.mulf %133, %137 : vector<1x8x8xf32>
    %139 = arith.truncf %138 : vector<1x8x8xf32> to vector<1x8x8xbf16>
    %140 = arith.truncf %112 : vector<1x8x8xf32> to vector<1x8x8xbf16>
    "tpu.trace_start"() <{level = 10 : i32, message = "bqk,bkd->bqd"}> : () -> ()
    %cst_31 = arith.constant dense<0.000000e+00> : vector<1x8x8xf32>
    %141 = tpu.matmul %139, %140, %cst_31 {dimension_numbers = #tpu.dot_dimension_numbers<[2], [1], [1], [2], [0, 0, 0, 1, 1, 2], [0], [0]>} : vector<1x8x8xbf16>, vector<1x8x8xbf16>, vector<1x8x8xf32> -> vector<1x8x8xf32>
    "tpu.trace_stop"() : () -> ()
    %142 = vector.shape_cast %141 : vector<1x8x8xf32> to vector<8x8xf32>
    %143 = arith.truncf %142 : vector<8x8xf32> to vector<8x8xbf16>
    %c0_32 = arith.constant 0 : index
    %c16 = arith.constant 16 : index
    %144 = vector.load %arg10[%c0_32, %c16] : memref<8x32xbf16, #tpu.memory_space<vmem>>, vector<8x8xbf16>
    tpu.vector_store %arg10[%c0_32, %c16], %143 {strides = array<i32>} : memref<8x32xbf16, #tpu.memory_space<vmem>>, vector<8x8xbf16>,
    %145 = vector.extract_strided_slice %19 {offsets = [0, 24], sizes = [8, 8], strides = [1, 1]} : vector<8x96xf32> to vector<8x8xf32>
    %146 = vector.shape_cast %145 : vector<8x8xf32> to vector<1x8x8xf32>
    %147 = vector.extract_strided_slice %19 {offsets = [0, 56], sizes = [8, 8], strides = [1, 1]} : vector<8x96xf32> to vector<8x8xf32>
    %148 = vector.shape_cast %147 : vector<8x8xf32> to vector<1x8x8xf32>
    %149 = vector.extract_strided_slice %19 {offsets = [0, 88], sizes = [8, 8], strides = [1, 1]} : vector<8x96xf32> to vector<8x8xf32>
    %150 = vector.shape_cast %149 : vector<8x8xf32> to vector<1x8x8xf32>
    %151 = arith.mulf %146, %21 : vector<1x8x8xf32>
    %152 = vector.extract_strided_slice %146 {offsets = [0, 0, 4], sizes = [1, 8, 4], strides = [1, 1, 1]} : vector<1x8x8xf32> to vector<1x8x4xf32>
    %153 = vector.extract_strided_slice %146 {offsets = [0, 0, 0], sizes = [1, 8, 4], strides = [1, 1, 1]} : vector<1x8x8xf32> to vector<1x8x4xf32>
    %154 = tpu.concatenate %152, %153 in 2 : vector<1x8x4xf32>, vector<1x8x4xf32> -> vector<1x8x8xf32>
    %155 = arith.mulf %154, %23 : vector<1x8x8xf32>
    %156 = arith.addf %151, %155 : vector<1x8x8xf32>
    %157 = arith.truncf %156 : vector<1x8x8xf32> to vector<1x8x8xbf16>
    %158 = arith.mulf %148, %21 : vector<1x8x8xf32>
    %159 = vector.extract_strided_slice %148 {offsets = [0, 0, 4], sizes = [1, 8, 4], strides = [1, 1, 1]} : vector<1x8x8xf32> to vector<1x8x4xf32>
    %160 = vector.extract_strided_slice %148 {offsets = [0, 0, 0], sizes = [1, 8, 4], strides = [1, 1, 1]} : vector<1x8x8xf32> to vector<1x8x4xf32>
    %161 = tpu.concatenate %159, %160 in 2 : vector<1x8x4xf32>, vector<1x8x4xf32> -> vector<1x8x8xf32>
    %162 = arith.mulf %161, %23 : vector<1x8x8xf32>
    %163 = arith.addf %158, %162 : vector<1x8x8xf32>
    %164 = arith.truncf %163 : vector<1x8x8xf32> to vector<1x8x8xbf16>
    "tpu.trace_start"() <{level = 10 : i32, message = "bqd,bkd->bqk"}> : () -> ()
    %cst_33 = arith.constant dense<0.000000e+00> : vector<1x8x8xf32>
    %165 = tpu.matmul %157, %164, %cst_33 {dimension_numbers = #tpu.dot_dimension_numbers<[2], [2], [1], [1], [0, 0, 0, 1, 1, 1], [0], [0]>} : vector<1x8x8xbf16>, vector<1x8x8xbf16>, vector<1x8x8xf32> -> vector<1x8x8xf32>
    "tpu.trace_stop"() : () -> ()
    %166 = arith.addf %165, %30 : vector<1x8x8xf32>
    %cst_34 = arith.constant dense<0xFF800000> : vector<1x8xf32>
    %167 = vector.multi_reduction <maximumf>, %166, %cst_34 [2] : vector<1x8x8xf32> to vector<1x8xf32>
    %168 = vector.shape_cast %167 : vector<1x8xf32> to vector<1x8x1xf32>
    %169 = vector.broadcast %168 : vector<1x8x1xf32> to vector<1x8x8xf32>
    %170 = arith.subf %166, %169 : vector<1x8x8xf32>
    %171 = math.exp %170 : vector<1x8x8xf32>
    %cst_35 = arith.constant dense<0.000000e+00> : vector<1x8xf32>
    %172 = vector.multi_reduction <add>, %171, %cst_35 [2] : vector<1x8x8xf32> to vector<1x8xf32>
    %173 = vector.shape_cast %172 : vector<1x8xf32> to vector<1x8x1xf32>
    %174 = tpu.reciprocal %173 {approx = true} : vector<1x8x1xf32> -> vector<1x8x1xf32>
    %175 = vector.broadcast %174 : vector<1x8x1xf32> to vector<1x8x8xf32>
    %176 = arith.mulf %171, %175 : vector<1x8x8xf32>
    %177 = arith.truncf %176 : vector<1x8x8xf32> to vector<1x8x8xbf16>
    %178 = arith.truncf %150 : vector<1x8x8xf32> to vector<1x8x8xbf16>
    "tpu.trace_start"() <{level = 10 : i32, message = "bqk,bkd->bqd"}> : () -> ()
    %cst_36 = arith.constant dense<0.000000e+00> : vector<1x8x8xf32>
    %179 = tpu.matmul %177, %178, %cst_36 {dimension_numbers = #tpu.dot_dimension_numbers<[2], [1], [1], [2], [0, 0, 0, 1, 1, 2], [0], [0]>} : vector<1x8x8xbf16>, vector<1x8x8xbf16>, vector<1x8x8xf32> -> vector<1x8x8xf32>
    "tpu.trace_stop"() : () -> ()
    %180 = vector.shape_cast %179 : vector<1x8x8xf32> to vector<8x8xf32>
    %181 = arith.truncf %180 : vector<8x8xf32> to vector<8x8xbf16>
    %c0_37 = arith.constant 0 : index
    %c24 = arith.constant 24 : index
    %182 = vector.load %arg10[%c0_37, %c24] : memref<8x32xbf16, #tpu.memory_space<vmem>>, vector<8x8xbf16>
    tpu.vector_store %arg10[%c0_37, %c24], %181 {strides = array<i32>} : memref<8x32xbf16, #tpu.memory_space<vmem>>, vector<8x8xbf16>,
    %c0_38 = arith.constant 0 : index
    %c0_39 = arith.constant 0 : index
    %183 = vector.load %arg10[%c0_38, %c0_39] : memref<8x32xbf16, #tpu.memory_space<vmem>>, vector<8x32xbf16>
    %c0_40 = arith.constant 0 : index
    %c0_41 = arith.constant 0 : index
    %184 = vector.load %arg3[%c0_40, %c0_41] : memref<32x32xbf16, #tpu.memory_space<vmem>>, vector<32x32xbf16>
    %cst_42 = arith.constant dense<0.000000e+00> : vector<8x32xf32>
    %185 = tpu.matmul %183, %184, %cst_42 {dimension_numbers = #tpu.dot_dimension_numbers<[1], [0], [0], [1], [0, 0, 1, 1], [], []>} : vector<8x32xbf16>, vector<32x32xbf16>, vector<8x32xf32> -> vector<8x32xf32>
    %c0_43 = arith.constant 0 : index
    %c0_44 = arith.constant 0 : index
    %186 = vector.load %arg4[%c0_43, %c0_44] : memref<1x32xf32, #tpu.memory_space<vmem>>, vector<1x32xf32>
    %187 = vector.broadcast %186 : vector<1x32xf32> to vector<8x32xf32>
    %188 = arith.addf %185, %187 : vector<8x32xf32>
    %189 = vector.shape_cast %188 : vector<8x32xf32> to vector<1x8x32xf32>
    %190 = arith.addf %189, %0 : vector<1x8x32xf32>
    %191 = arith.mulf %190, %190 : vector<1x8x32xf32>
    %cst_45 = arith.constant dense<0.000000e+00> : vector<1x8xf32>
    %192 = vector.multi_reduction <add>, %191, %cst_45 [2] : vector<1x8x32xf32> to vector<1x8xf32>
    %193 = vector.shape_cast %192 : vector<1x8xf32> to vector<1x8x1xf32>
    %cst_46 = arith.constant 3.200000e+01 : f32
    %194 = vector.broadcast %cst_46 : f32 to vector<1x8x1xf32>
    %195 = arith.divf %193, %194 : vector<1x8x1xf32>
    %cst_47 = arith.constant 1.000000e-07 : f32
    %196 = vector.broadcast %cst_47 : f32 to vector<1x8x1xf32>
    %197 = arith.addf %196, %195 : vector<1x8x1xf32>
    %198 = math.sqrt %197 : vector<1x8x1xf32>
    %199 = vector.broadcast %198 : vector<1x8x1xf32> to vector<1x8x32xf32>
    %200 = arith.divf %190, %199 : vector<1x8x32xf32>
    %201 = vector.shape_cast %2 : vector<1x32xf32> to vector<1x1x32xf32>
    %202 = vector.broadcast %201 : vector<1x1x32xf32> to vector<1x8x32xf32>
    %203 = arith.mulf %200, %202 : vector<1x8x32xf32>
    %c0_48 = arith.constant 0 : index
    %c0_49 = arith.constant 0 : index
    %c0_50 = arith.constant 0 : index
    %204 = vector.load %arg9[%c0_48, %c0_49, %c0_50] : memref<1x8x32xf32, #tpu.memory_space<vmem>>, vector<1x8x32xf32>
    tpu.vector_store %arg9[%c0_48, %c0_49, %c0_50], %203 {strides = array<i32>} : memref<1x8x32xf32, #tpu.memory_space<vmem>>, vector<1x8x32xf32>,
    return
  }
  func.func @transform_0(%arg0: i32) -> (i32, i32, i32) {
    %c0_i32 = arith.constant 0 : i32
    %c0_i32_0 = arith.constant 0 : i32
    %c0_i32_1 = arith.constant 0 : i32
    return %arg0, %c0_i32, %c0_i32_0 : i32, i32, i32
  }
  func.func @transform_1(%arg0: i32) -> (i32, i32) {
    %c0_i32 = arith.constant 0 : i32
    %c0_i32_0 = arith.constant 0 : i32
    %c0_i32_1 = arith.constant 0 : i32
    return %c0_i32, %c0_i32_0 : i32, i32
  }
  func.func @transform_2(%arg0: i32) -> (i32, i32) {
    %c0_i32 = arith.constant 0 : i32
    %c0_i32_0 = arith.constant 0 : i32
    %c0_i32_1 = arith.constant 0 : i32
    return %c0_i32, %c0_i32_0 : i32, i32
  }
  func.func @transform_3(%arg0: i32) -> (i32, i32) {
    %c0_i32 = arith.constant 0 : i32
    %c0_i32_0 = arith.constant 0 : i32
    %c0_i32_1 = arith.constant 0 : i32
    return %c0_i32, %c0_i32_0 : i32, i32
  }
  func.func @transform_4(%arg0: i32) -> (i32, i32) {
    %c0_i32 = arith.constant 0 : i32
    %c0_i32_0 = arith.constant 0 : i32
    %c0_i32_1 = arith.constant 0 : i32
    return %c0_i32, %c0_i32_0 : i32, i32
  }
  func.func @transform_5(%arg0: i32) -> (i32, i32) {
    %c0_i32 = arith.constant 0 : i32
    %c0_i32_0 = arith.constant 0 : i32
    %c0_i32_1 = arith.constant 0 : i32
    return %c0_i32, %c0_i32_0 : i32, i32
  }
  func.func @transform_6(%arg0: i32) -> (i32, i32) {
    %c0_i32 = arith.constant 0 : i32
    %c0_i32_0 = arith.constant 0 : i32
    %c0_i32_1 = arith.constant 0 : i32
    return %c0_i32, %c0_i32_0 : i32, i32
  }
  func.func @transform_7(%arg0: i32) -> (i32, i32) {
    %c0_i32 = arith.constant 0 : i32
    %c0_i32_0 = arith.constant 0 : i32
    %c0_i32_1 = arith.constant 0 : i32
    return %c0_i32, %c0_i32_0 : i32, i32
  }
  func.func @transform_8(%arg0: i32) -> (i32, i32, i32) {
    %c0_i32 = arith.constant 0 : i32
    %c0_i32_0 = arith.constant 0 : i32
    %c0_i32_1 = arith.constant 0 : i32
    return %arg0, %c0_i32, %c0_i32_0 : i32, i32, i32
  }
}

module attributes {stable_mosaic.version = 11 : i64} {
  func.func @transformer_block_kernel(%arg0: i32, %arg1: memref<1x8x32xf32, #tpu.memory_space<vmem>>, %arg2: memref<32x96xbf16, #tpu.memory_space<vmem>>, %arg3: memref<32x32xbf16, #tpu.memory_space<vmem>>, %arg4: memref<1x32xf32, #tpu.memory_space<vmem>>, %arg5: memref<1x32xf32, #tpu.memory_space<vmem>>, %arg6: memref<1x32xf32, #tpu.memory_space<vmem>>, %arg7: memref<8x8xf32, #tpu.memory_space<vmem>>, %arg8: memref<8x8xf32, #tpu.memory_space<vmem>>, %arg9: memref<1x8x32xf32, #tpu.memory_space<vmem>>, %arg10: memref<8x32xbf16, #tpu.memory_space<vmem>>) attributes {dimension_semantics = [#tpu.dimension_semantics<parallel>], iteration_bounds = array<i64: 2>, scalar_prefetch = 0 : i64, scratch_operands = 1 : i64, tpu.core_type = #tpu.core_type<tc>, window_params = [{transform_indices = @transform_0, window_bounds = array<i64: 1, 8, 32>}, {pipeline_mode = #tpu.pipeline_mode<synchronous>, transform_indices = @transform_1, window_bounds = array<i64: 32, 96>}, {pipeline_mode = #tpu.pipeline_mode<synchronous>, transform_indices = @transform_2, window_bounds = array<i64: 32, 32>}, {pipeline_mode = #tpu.pipeline_mode<synchronous>, transform_indices = @transform_3, window_bounds = array<i64: 1, 32>}, {pipeline_mode = #tpu.pipeline_mode<synchronous>, transform_indices = @transform_4, window_bounds = array<i64: 1, 32>}, {pipeline_mode = #tpu.pipeline_mode<synchronous>, transform_indices = @transform_5, window_bounds = array<i64: 1, 32>}, {pipeline_mode = #tpu.pipeline_mode<synchronous>, transform_indices = @transform_6, window_bounds = array<i64: 8, 8>}, {pipeline_mode = #tpu.pipeline_mode<synchronous>, transform_indices = @transform_7, window_bounds = array<i64: 8, 8>}, {transform_indices = @transform_8, window_bounds = array<i64: 1, 8, 32>}]} {
    %c0 = arith.constant 0 : index
    %c0_0 = arith.constant 0 : index
    %c0_1 = arith.constant 0 : index
    %0 = vector.load %arg1[%c0, %c0_0, %c0_1] : memref<1x8x32xf32, #tpu.memory_space<vmem>>, vector<1x8x32xf32>
    %c0_2 = arith.constant 0 : index
    %c0_3 = arith.constant 0 : index
    %1 = vector.load %arg5[%c0_2, %c0_3] : memref<1x32xf32, #tpu.memory_space<vmem>>, vector<1x32xf32>
    %c0_4 = arith.constant 0 : index
    %c0_5 = arith.constant 0 : index
    %2 = vector.load %arg6[%c0_4, %c0_5] : memref<1x32xf32, #tpu.memory_space<vmem>>, vector<1x32xf32>
    %3 = arith.mulf %0, %0 : vector<1x8x32xf32>
    %cst = arith.constant dense<0.000000e+00> : vector<1x8xf32>
    %4 = vector.multi_reduction <add>, %3, %cst [2] : vector<1x8x32xf32> to vector<1x8xf32>
    %5 = vector.shape_cast %4 : vector<1x8xf32> to vector<1x8x1xf32>
    %cst_6 = arith.constant 3.200000e+01 : f32
    %6 = vector.broadcast %cst_6 : f32 to vector<1x8x1xf32>
    %7 = arith.divf %5, %6 : vector<1x8x1xf32>
    %cst_7 = arith.constant 1.000000e-07 : f32
    %8 = vector.broadcast %cst_7 : f32 to vector<1x8x1xf32>
    %9 = arith.addf %8, %7 : vector<1x8x1xf32>
    %10 = math.sqrt %9 : vector<1x8x1xf32>
    %11 = vector.broadcast %10 : vector<1x8x1xf32> to vector<1x8x32xf32>
    %12 = arith.divf %0, %11 : vector<1x8x32xf32>
    %13 = vector.shape_cast %1 : vector<1x32xf32> to vector<1x1x32xf32>
    %14 = vector.broadcast %13 : vector<1x1x32xf32> to vector<1x8x32xf32>
    %15 = arith.mulf %12, %14 : vector<1x8x32xf32>
    %16 = arith.truncf %15 : vector<1x8x32xf32> to vector<1x8x32xbf16>
    %17 = vector.shape_cast %16 : vector<1x8x32xbf16> to vector<8x32xbf16>
    %c0_8 = arith.constant 0 : index
    %c0_9 = arith.constant 0 : index
    %18 = vector.load %arg2[%c0_8, %c0_9] : memref<32x96xbf16, #tpu.memory_space<vmem>>, vector<32x96xbf16>
    %cst_10 = arith.constant dense<0.000000e+00> : vector<8x96xf32>
    %19 = tpu.matmul %17, %18, %cst_10 {dimension_numbers = #tpu.dot_dimension_numbers<[1], [0], [0], [1], [0, 0, 1, 1], [], []>} : vector<8x32xbf16>, vector<32x96xbf16>, vector<8x96xf32> -> vector<8x96xf32>
    %c0_11 = arith.constant 0 : index
    %c0_12 = arith.constant 0 : index
    %20 = vector.load %arg7[%c0_11, %c0_12] : memref<8x8xf32, #tpu.memory_space<vmem>>, vector<8x8xf32>
    %21 = vector.shape_cast %20 : vector<8x8xf32> to vector<1x8x8xf32>
    %c0_13 = arith.constant 0 : index
    %c0_14 = arith.constant 0 : index
    %22 = vector.load %arg8[%c0_13, %c0_14] : memref<8x8xf32, #tpu.memory_space<vmem>>, vector<8x8xf32>
    %23 = vector.shape_cast %22 : vector<8x8xf32> to vector<1x8x8xf32>
    %24 = tpu.iota {dimensions = array<i32: 0>} : vector<8x8xi32>
    %25 = tpu.iota {dimensions = array<i32: 1>} : vector<8x8xi32>
    %26 = arith.cmpi sge, %24, %25 : vector<8x8xi32>
    %cst_15 = arith.constant 0.000000e+00 : f32
    %cst_16 = arith.constant -1.000000e+30 : f32
    %27 = vector.broadcast %cst_15 : f32 to vector<8x8xf32>
    %28 = vector.broadcast %cst_16 : f32 to vector<8x8xf32>
    %29 = arith.select %26, %27, %28 : vector<8x8xi1>, vector<8x8xf32>
    %30 = vector.shape_cast %29 : vector<8x8xf32> to vector<1x8x8xf32>
    %31 = vector.extract_strided_slice %19 {offsets = [0, 0], sizes = [8, 8], strides = [1, 1]} : vector<8x96xf32> to vector<8x8xf32>
    %32 = vector.shape_cast %31 : vector<8x8xf32> to vector<1x8x8xf32>
    %33 = vector.extract_strided_slice %19 {offsets = [0, 32], sizes = [8, 8], strides = [1, 1]} : vector<8x96xf32> to vector<8x8xf32>
    %34 = vector.shape_cast %33 : vector<8x8xf32> to vector<1x8x8xf32>
    %35 = vector.extract_strided_slice %19 {offsets = [0, 64], sizes = [8, 8], strides = [1, 1]} : vector<8x96xf32> to vector<8x8xf32>
    %36 = vector.shape_cast %35 : vector<8x8xf32> to vector<1x8x8xf32>
    %37 = arith.mulf %32, %21 : vector<1x8x8xf32>
    %38 = vector.extract_strided_slice %32 {offsets = [0, 0, 4], sizes = [1, 8, 4], strides = [1, 1, 1]} : vector<1x8x8xf32> to vector<1x8x4xf32>
    %39 = vector.extract_strided_slice %32 {offsets = [0, 0, 0], sizes = [1, 8, 4], strides = [1, 1, 1]} : vector<1x8x8xf32> to vector<1x8x4xf32>
    %40 = tpu.concatenate %38, %39 in 2 : vector<1x8x4xf32>, vector<1x8x4xf32> -> vector<1x8x8xf32>
    %41 = arith.mulf %40, %23 : vector<1x8x8xf32>
    %42 = arith.addf %37, %41 : vector<1x8x8xf32>
    %43 = arith.truncf %42 : vector<1x8x8xf32> to vector<1x8x8xbf16>
    %44 = arith.mulf %34, %21 : vector<1x8x8xf32>
    %45 = vector.extract_strided_slice %34 {offsets = [0, 0, 4], sizes = [1, 8, 4], strides = [1, 1, 1]} : vector<1x8x8xf32> to vector<1x8x4xf32>
    %46 = vector.extract_strided_slice %34 {offsets = [0, 0, 0], sizes = [1, 8, 4], strides = [1, 1, 1]} : vector<1x8x8xf32> to vector<1x8x4xf32>
    %47 = tpu.concatenate %45, %46 in 2 : vector<1x8x4xf32>, vector<1x8x4xf32> -> vector<1x8x8xf32>
    %48 = arith.mulf %47, %23 : vector<1x8x8xf32>
    %49 = arith.addf %44, %48 : vector<1x8x8xf32>
    %50 = arith.truncf %49 : vector<1x8x8xf32> to vector<1x8x8xbf16>
    "tpu.trace_start"() <{level = 10 : i32, message = "bqd,bkd->bqk"}> : () -> ()
    %cst_17 = arith.constant dense<0.000000e+00> : vector<1x8x8xf32>
    %51 = tpu.matmul %43, %50, %cst_17 {dimension_numbers = #tpu.dot_dimension_numbers<[2], [2], [1], [1], [0, 0, 0, 1, 1, 1], [0], [0]>} : vector<1x8x8xbf16>, vector<1x8x8xbf16>, vector<1x8x8xf32> -> vector<1x8x8xf32>
    "tpu.trace_stop"() : () -> ()
    %52 = arith.addf %51, %30 : vector<1x8x8xf32>
    %cst_18 = arith.constant dense<0xFF800000> : vector<1x8xf32>
    %53 = vector.multi_reduction <maximumf>, %52, %cst_18 [2] : vector<1x8x8xf32> to vector<1x8xf32>
    %54 = vector.shape_cast %53 : vector<1x8xf32> to vector<1x8x1xf32>
    %55 = vector.broadcast %54 : vector<1x8x1xf32> to vector<1x8x8xf32>
    %56 = arith.subf %52, %55 : vector<1x8x8xf32>
    %57 = math.exp %56 : vector<1x8x8xf32>
    %cst_19 = arith.constant dense<0.000000e+00> : vector<1x8xf32>
    %58 = vector.multi_reduction <add>, %57, %cst_19 [2] : vector<1x8x8xf32> to vector<1x8xf32>
    %59 = vector.shape_cast %58 : vector<1x8xf32> to vector<1x8x1xf32>
    %60 = tpu.reciprocal %59 {approx = true} : vector<1x8x1xf32> -> vector<1x8x1xf32>
    %61 = vector.broadcast %60 : vector<1x8x1xf32> to vector<1x8x8xf32>
    %62 = arith.mulf %57, %61 : vector<1x8x8xf32>
    %63 = arith.truncf %62 : vector<1x8x8xf32> to vector<1x8x8xbf16>
    %64 = arith.truncf %36 : vector<1x8x8xf32> to vector<1x8x8xbf16>
    "tpu.trace_start"() <{level = 10 : i32, message = "bqk,bkd->bqd"}> : () -> ()
    %cst_20 = arith.constant dense<0.000000e+00> : vector<1x8x8xf32>
    %65 = tpu.matmul %63, %64, %cst_20 {dimension_numbers = #tpu.dot_dimension_numbers<[2], [1], [1], [2], [0, 0, 0, 1, 1, 2], [0], [0]>} : vector<1x8x8xbf16>, vector<1x8x8xbf16>, vector<1x8x8xf32> -> vector<1x8x8xf32>
    "tpu.trace_stop"() : () -> ()
    %66 = vector.shape_cast %65 : vector<1x8x8xf32> to vector<8x8xf32>
    %67 = arith.truncf %66 : vector<8x8xf32> to vector<8x8xbf16>
    %c0_21 = arith.constant 0 : index
    %c0_22 = arith.constant 0 : index
    %68 = vector.load %arg10[%c0_21, %c0_22] : memref<8x32xbf16, #tpu.memory_space<vmem>>, vector<8x8xbf16>
    tpu.vector_store %arg10[%c0_21, %c0_22], %67 {strides = array<i32>} : memref<8x32xbf16, #tpu.memory_space<vmem>>, vector<8x8xbf16>,
    %69 = vector.extract_strided_slice %19 {offsets = [0, 8], sizes = [8, 8], strides = [1, 1]} : vector<8x96xf32> to vector<8x8xf32>
    %70 = vector.shape_cast %69 : vector<8x8xf32> to vector<1x8x8xf32>
    %71 = vector.extract_strided_slice %19 {offsets = [0, 40], sizes = [8, 8], strides = [1, 1]} : vector<8x96xf32> to vector<8x8xf32>
    %72 = vector.shape_cast %71 : vector<8x8xf32> to vector<1x8x8xf32>
    %73 = vector.extract_strided_slice %19 {offsets = [0, 72], sizes = [8, 8], strides = [1, 1]} : vector<8x96xf32> to vector<8x8xf32>
    %74 = vector.shape_cast %73 : vector<8x8xf32> to vector<1x8x8xf32>
    %75 = arith.mulf %70, %21 : vector<1x8x8xf32>
    %76 = vector.extract_strided_slice %70 {offsets = [0, 0, 4], sizes = [1, 8, 4], strides = [1, 1, 1]} : vector<1x8x8xf32> to vector<1x8x4xf32>
    %77 = vector.extract_strided_slice %70 {offsets = [0, 0, 0], sizes = [1, 8, 4], strides = [1, 1, 1]} : vector<1x8x8xf32> to vector<1x8x4xf32>
    %78 = tpu.concatenate %76, %77 in 2 : vector<1x8x4xf32>, vector<1x8x4xf32> -> vector<1x8x8xf32>
    %79 = arith.mulf %78, %23 : vector<1x8x8xf32>
    %80 = arith.addf %75, %79 : vector<1x8x8xf32>
    %81 = arith.truncf %80 : vector<1x8x8xf32> to vector<1x8x8xbf16>
    %82 = arith.mulf %72, %21 : vector<1x8x8xf32>
    %83 = vector.extract_strided_slice %72 {offsets = [0, 0, 4], sizes = [1, 8, 4], strides = [1, 1, 1]} : vector<1x8x8xf32> to vector<1x8x4xf32>
    %84 = vector.extract_strided_slice %72 {offsets = [0, 0, 0], sizes = [1, 8, 4], strides = [1, 1, 1]} : vector<1x8x8xf32> to vector<1x8x4xf32>
    %85 = tpu.concatenate %83, %84 in 2 : vector<1x8x4xf32>, vector<1x8x4xf32> -> vector<1x8x8xf32>
    %86 = arith.mulf %85, %23 : vector<1x8x8xf32>
    %87 = arith.addf %82, %86 : vector<1x8x8xf32>
    %88 = arith.truncf %87 : vector<1x8x8xf32> to vector<1x8x8xbf16>
    "tpu.trace_start"() <{level = 10 : i32, message = "bqd,bkd->bqk"}> : () -> ()
    %cst_23 = arith.constant dense<0.000000e+00> : vector<1x8x8xf32>
    %89 = tpu.matmul %81, %88, %cst_23 {dimension_numbers = #tpu.dot_dimension_numbers<[2], [2], [1], [1], [0, 0, 0, 1, 1, 1], [0], [0]>} : vector<1x8x8xbf16>, vector<1x8x8xbf16>, vector<1x8x8xf32> -> vector<1x8x8xf32>
    "tpu.trace_stop"() : () -> ()
    %90 = arith.addf %89, %30 : vector<1x8x8xf32>
    %cst_24 = arith.constant dense<0xFF800000> : vector<1x8xf32>
    %91 = vector.multi_reduction <maximumf>, %90, %cst_24 [2] : vector<1x8x8xf32> to vector<1x8xf32>
    %92 = vector.shape_cast %91 : vector<1x8xf32> to vector<1x8x1xf32>
    %93 = vector.broadcast %92 : vector<1x8x1xf32> to vector<1x8x8xf32>
    %94 = arith.subf %90, %93 : vector<1x8x8xf32>
    %95 = math.exp %94 : vector<1x8x8xf32>
    %cst_25 = arith.constant dense<0.000000e+00> : vector<1x8xf32>
    %96 = vector.multi_reduction <add>, %95, %cst_25 [2] : vector<1x8x8xf32> to vector<1x8xf32>
    %97 = vector.shape_cast %96 : vector<1x8xf32> to vector<1x8x1xf32>
    %98 = tpu.reciprocal %97 {approx = true} : vector<1x8x1xf32> -> vector<1x8x1xf32>
    %99 = vector.broadcast %98 : vector<1x8x1xf32> to vector<1x8x8xf32>
    %100 = arith.mulf %95, %99 : vector<1x8x8xf32>
    %101 = arith.truncf %100 : vector<1x8x8xf32> to vector<1x8x8xbf16>
    %102 = arith.truncf %74 : vector<1x8x8xf32> to vector<1x8x8xbf16>
    "tpu.trace_start"() <{level = 10 : i32, message = "bqk,bkd->bqd"}> : () -> ()
    %cst_26 = arith.constant dense<0.000000e+00> : vector<1x8x8xf32>
    %103 = tpu.matmul %101, %102, %cst_26 {dimension_numbers = #tpu.dot_dimension_numbers<[2], [1], [1], [2], [0, 0, 0, 1, 1, 2], [0], [0]>} : vector<1x8x8xbf16>, vector<1x8x8xbf16>, vector<1x8x8xf32> -> vector<1x8x8xf32>
    "tpu.trace_stop"() : () -> ()
    %104 = vector.shape_cast %103 : vector<1x8x8xf32> to vector<8x8xf32>
    %105 = arith.truncf %104 : vector<8x8xf32> to vector<8x8xbf16>
    %c0_27 = arith.constant 0 : index
    %c8 = arith.constant 8 : index
    %106 = vector.load %arg10[%c0_27, %c8] : memref<8x32xbf16, #tpu.memory_space<vmem>>, vector<8x8xbf16>
    tpu.vector_store %arg10[%c0_27, %c8], %105 {strides = array<i32>} : memref<8x32xbf16, #tpu.memory_space<vmem>>, vector<8x8xbf16>,
    %107 = vector.extract_strided_slice %19 {offsets = [0, 16], sizes = [8, 8], strides = [1, 1]} : vector<8x96xf32> to vector<8x8xf32>
    %108 = vector.shape_cast %107 : vector<8x8xf32> to vector<1x8x8xf32>
    %109 = vector.extract_strided_slice %19 {offsets = [0, 48], sizes = [8, 8], strides = [1, 1]} : vector<8x96xf32> to vector<8x8xf32>
    %110 = vector.shape_cast %109 : vector<8x8xf32> to vector<1x8x8xf32>
    %111 = vector.extract_strided_slice %19 {offsets = [0, 80], sizes = [8, 8], strides = [1, 1]} : vector<8x96xf32> to vector<8x8xf32>
    %112 = vector.shape_cast %111 : vector<8x8xf32> to vector<1x8x8xf32>
    %113 = arith.mulf %108, %21 : vector<1x8x8xf32>
    %114 = vector.extract_strided_slice %108 {offsets = [0, 0, 4], sizes = [1, 8, 4], strides = [1, 1, 1]} : vector<1x8x8xf32> to vector<1x8x4xf32>
    %115 = vector.extract_strided_slice %108 {offsets = [0, 0, 0], sizes = [1, 8, 4], strides = [1, 1, 1]} : vector<1x8x8xf32> to vector<1x8x4xf32>
    %116 = tpu.concatenate %114, %115 in 2 : vector<1x8x4xf32>, vector<1x8x4xf32> -> vector<1x8x8xf32>
    %117 = arith.mulf %116, %23 : vector<1x8x8xf32>
    %118 = arith.addf %113, %117 : vector<1x8x8xf32>
    %119 = arith.truncf %118 : vector<1x8x8xf32> to vector<1x8x8xbf16>
    %120 = arith.mulf %110, %21 : vector<1x8x8xf32>
    %121 = vector.extract_strided_slice %110 {offsets = [0, 0, 4], sizes = [1, 8, 4], strides = [1, 1, 1]} : vector<1x8x8xf32> to vector<1x8x4xf32>
    %122 = vector.extract_strided_slice %110 {offsets = [0, 0, 0], sizes = [1, 8, 4], strides = [1, 1, 1]} : vector<1x8x8xf32> to vector<1x8x4xf32>
    %123 = tpu.concatenate %121, %122 in 2 : vector<1x8x4xf32>, vector<1x8x4xf32> -> vector<1x8x8xf32>
    %124 = arith.mulf %123, %23 : vector<1x8x8xf32>
    %125 = arith.addf %120, %124 : vector<1x8x8xf32>
    %126 = arith.truncf %125 : vector<1x8x8xf32> to vector<1x8x8xbf16>
    "tpu.trace_start"() <{level = 10 : i32, message = "bqd,bkd->bqk"}> : () -> ()
    %cst_28 = arith.constant dense<0.000000e+00> : vector<1x8x8xf32>
    %127 = tpu.matmul %119, %126, %cst_28 {dimension_numbers = #tpu.dot_dimension_numbers<[2], [2], [1], [1], [0, 0, 0, 1, 1, 1], [0], [0]>} : vector<1x8x8xbf16>, vector<1x8x8xbf16>, vector<1x8x8xf32> -> vector<1x8x8xf32>
    "tpu.trace_stop"() : () -> ()
    %128 = arith.addf %127, %30 : vector<1x8x8xf32>
    %cst_29 = arith.constant dense<0xFF800000> : vector<1x8xf32>
    %129 = vector.multi_reduction <maximumf>, %128, %cst_29 [2] : vector<1x8x8xf32> to vector<1x8xf32>
    %130 = vector.shape_cast %129 : vector<1x8xf32> to vector<1x8x1xf32>
    %131 = vector.broadcast %130 : vector<1x8x1xf32> to vector<1x8x8xf32>
    %132 = arith.subf %128, %131 : vector<1x8x8xf32>
    %133 = math.exp %132 : vector<1x8x8xf32>
    %cst_30 = arith.constant dense<0.000000e+00> : vector<1x8xf32>
    %134 = vector.multi_reduction <add>, %133, %cst_30 [2] : vector<1x8x8xf32> to vector<1x8xf32>
    %135 = vector.shape_cast %134 : vector<1x8xf32> to vector<1x8x1xf32>
    %136 = tpu.reciprocal %135 {approx = true} : vector<1x8x1xf32> -> vector<1x8x1xf32>
    %137 = vector.broadcast %136 : vector<1x8x1xf32> to vector<1x8x8xf32>
    %138 = arith.mulf %133, %137 : vector<1x8x8xf32>
    %139 = arith.truncf %138 : vector<1x8x8xf32> to vector<1x8x8xbf16>
    %140 = arith.truncf %112 : vector<1x8x8xf32> to vector<1x8x8xbf16>
    "tpu.trace_start"() <{level = 10 : i32, message = "bqk,bkd->bqd"}> : () -> ()
    %cst_31 = arith.constant dense<0.000000e+00> : vector<1x8x8xf32>
    %141 = tpu.matmul %139, %140, %cst_31 {dimension_numbers = #tpu.dot_dimension_numbers<[2], [1], [1], [2], [0, 0, 0, 1, 1, 2], [0], [0]>} : vector<1x8x8xbf16>, vector<1x8x8xbf16>, vector<1x8x8xf32> -> vector<1x8x8xf32>
    "tpu.trace_stop"() : () -> ()
    %142 = vector.shape_cast %141 : vector<1x8x8xf32> to vector<8x8xf32>
    %143 = arith.truncf %142 : vector<8x8xf32> to vector<8x8xbf16>
    %c0_32 = arith.constant 0 : index
    %c16 = arith.constant 16 : index
    %144 = vector.load %arg10[%c0_32, %c16] : memref<8x32xbf16, #tpu.memory_space<vmem>>, vector<8x8xbf16>
    tpu.vector_store %arg10[%c0_32, %c16], %143 {strides = array<i32>} : memref<8x32xbf16, #tpu.memory_space<vmem>>, vector<8x8xbf16>,
    %145 = vector.extract_strided_slice %19 {offsets = [0, 24], sizes = [8, 8], strides = [1, 1]} : vector<8x96xf32> to vector<8x8xf32>
    %146 = vector.shape_cast %145 : vector<8x8xf32> to vector<1x8x8xf32>
    %147 = vector.extract_strided_slice %19 {offsets = [0, 56], sizes = [8, 8], strides = [1, 1]} : vector<8x96xf32> to vector<8x8xf32>
    %148 = vector.shape_cast %147 : vector<8x8xf32> to vector<1x8x8xf32>
    %149 = vector.extract_strided_slice %19 {offsets = [0, 88], sizes = [8, 8], strides = [1, 1]} : vector<8x96xf32> to vector<8x8xf32>
    %150 = vector.shape_cast %149 : vector<8x8xf32> to vector<1x8x8xf32>
    %151 = arith.mulf %146, %21 : vector<1x8x8xf32>
    %152 = vector.extract_strided_slice %146 {offsets = [0, 0, 4], sizes = [1, 8, 4], strides = [1, 1, 1]} : vector<1x8x8xf32> to vector<1x8x4xf32>
    %153 = vector.extract_strided_slice %146 {offsets = [0, 0, 0], sizes = [1, 8, 4], strides = [1, 1, 1]} : vector<1x8x8xf32> to vector<1x8x4xf32>
    %154 = tpu.concatenate %152, %153 in 2 : vector<1x8x4xf32>, vector<1x8x4xf32> -> vector<1x8x8xf32>
    %155 = arith.mulf %154, %23 : vector<1x8x8xf32>
    %156 = arith.addf %151, %155 : vector<1x8x8xf32>
    %157 = arith.truncf %156 : vector<1x8x8xf32> to vector<1x8x8xbf16>
    %158 = arith.mulf %148, %21 : vector<1x8x8xf32>
    %159 = vector.extract_strided_slice %148 {offsets = [0, 0, 4], sizes = [1, 8, 4], strides = [1, 1, 1]} : vector<1x8x8xf32> to vector<1x8x4xf32>
    %160 = vector.extract_strided_slice %148 {offsets = [0, 0, 0], sizes = [1, 8, 4], strides = [1, 1, 1]} : vector<1x8x8xf32> to vector<1x8x4xf32>
    %161 = tpu.concatenate %159, %160 in 2 : vector<1x8x4xf32>, vector<1x8x4xf32> -> vector<1x8x8xf32>
    %162 = arith.mulf %161, %23 : vector<1x8x8xf32>
    %163 = arith.addf %158, %162 : vector<1x8x8xf32>
    %164 = arith.truncf %163 : vector<1x8x8xf32> to vector<1x8x8xbf16>
    "tpu.trace_start"() <{level = 10 : i32, message = "bqd,bkd->bqk"}> : () -> ()
    %cst_33 = arith.constant dense<0.000000e+00> : vector<1x8x8xf32>
    %165 = tpu.matmul %157, %164, %cst_33 {dimension_numbers = #tpu.dot_dimension_numbers<[2], [2], [1], [1], [0, 0, 0, 1, 1, 1], [0], [0]>} : vector<1x8x8xbf16>, vector<1x8x8xbf16>, vector<1x8x8xf32> -> vector<1x8x8xf32>
    "tpu.trace_stop"() : () -> ()
    %166 = arith.addf %165, %30 : vector<1x8x8xf32>
    %cst_34 = arith.constant dense<0xFF800000> : vector<1x8xf32>
    %167 = vector.multi_reduction <maximumf>, %166, %cst_34 [2] : vector<1x8x8xf32> to vector<1x8xf32>
    %168 = vector.shape_cast %167 : vector<1x8xf32> to vector<1x8x1xf32>
    %169 = vector.broadcast %168 : vector<1x8x1xf32> to vector<1x8x8xf32>
    %170 = arith.subf %166, %169 : vector<1x8x8xf32>
    %171 = math.exp %170 : vector<1x8x8xf32>
    %cst_35 = arith.constant dense<0.000000e+00> : vector<1x8xf32>
    %172 = vector.multi_reduction <add>, %171, %cst_35 [2] : vector<1x8x8xf32> to vector<1x8xf32>
    %173 = vector.shape_cast %172 : vector<1x8xf32> to vector<1x8x1xf32>
    %174 = tpu.reciprocal %173 {approx = true} : vector<1x8x1xf32> -> vector<1x8x1xf32>
    %175 = vector.broadcast %174 : vector<1x8x1xf32> to vector<1x8x8xf32>
    %176 = arith.mulf %171, %175 : vector<1x8x8xf32>
    %177 = arith.truncf %176 : vector<1x8x8xf32> to vector<1x8x8xbf16>
    %178 = arith.truncf %150 : vector<1x8x8xf32> to vector<1x8x8xbf16>
    "tpu.trace_start"() <{level = 10 : i32, message = "bqk,bkd->bqd"}> : () -> ()
    %cst_36 = arith.constant dense<0.000000e+00> : vector<1x8x8xf32>
    %179 = tpu.matmul %177, %178, %cst_36 {dimension_numbers = #tpu.dot_dimension_numbers<[2], [1], [1], [2], [0, 0, 0, 1, 1, 2], [0], [0]>} : vector<1x8x8xbf16>, vector<1x8x8xbf16>, vector<1x8x8xf32> -> vector<1x8x8xf32>
    "tpu.trace_stop"() : () -> ()
    %180 = vector.shape_cast %179 : vector<1x8x8xf32> to vector<8x8xf32>
    %181 = arith.truncf %180 : vector<8x8xf32> to vector<8x8xbf16>
    %c0_37 = arith.constant 0 : index
    %c24 = arith.constant 24 : index
    %182 = vector.load %arg10[%c0_37, %c24] : memref<8x32xbf16, #tpu.memory_space<vmem>>, vector<8x8xbf16>
    tpu.vector_store %arg10[%c0_37, %c24], %181 {strides = array<i32>} : memref<8x32xbf16, #tpu.memory_space<vmem>>, vector<8x8xbf16>,
    %c0_38 = arith.constant 0 : index
    %c0_39 = arith.constant 0 : index
    %183 = vector.load %arg10[%c0_38, %c0_39] : memref<8x32xbf16, #tpu.memory_space<vmem>>, vector<8x32xbf16>
    %c0_40 = arith.constant 0 : index
    %c0_41 = arith.constant 0 : index
    %184 = vector.load %arg3[%c0_40, %c0_41] : memref<32x32xbf16, #tpu.memory_space<vmem>>, vector<32x32xbf16>
    %cst_42 = arith.constant dense<0.000000e+00> : vector<8x32xf32>
    %185 = tpu.matmul %183, %184, %cst_42 {dimension_numbers = #tpu.dot_dimension_numbers<[1], [0], [0], [1], [0, 0, 1, 1], [], []>} : vector<8x32xbf16>, vector<32x32xbf16>, vector<8x32xf32> -> vector<8x32xf32>
    %c0_43 = arith.constant 0 : index
    %c0_44 = arith.constant 0 : index
    %186 = vector.load %arg4[%c0_43, %c0_44] : memref<1x32xf32, #tpu.memory_space<vmem>>, vector<1x32xf32>
    %187 = vector.broadcast %186 : vector<1x32xf32> to vector<8x32xf32>
    %188 = arith.addf %185, %187 : vector<8x32xf32>
    %189 = vector.shape_cast %188 : vector<8x32xf32> to vector<1x8x32xf32>
    %190 = arith.addf %189, %0 : vector<1x8x32xf32>
    %191 = arith.mulf %190, %190 : vector<1x8x32xf32>
    %cst_45 = arith.constant dense<0.000000e+00> : vector<1x8xf32>
    %192 = vector.multi_reduction <add>, %191, %cst_45 [2] : vector<1x8x32xf32> to vector<1x8xf32>
    %193 = vector.shape_cast %192 : vector<1x8xf32> to vector<1x8x1xf32>
    %cst_46 = arith.constant 3.200000e+01 : f32
    %194 = vector.broadcast %cst_46 : f32 to vector<1x8x1xf32>
    %195 = arith.divf %193, %194 : vector<1x8x1xf32>
    %cst_47 = arith.constant 1.000000e-07 : f32
    %196 = vector.broadcast %cst_47 : f32 to vector<1x8x1xf32>
    %197 = arith.addf %196, %195 : vector<1x8x1xf32>
    %198 = math.sqrt %197 : vector<1x8x1xf32>
    %199 = vector.broadcast %198 : vector<1x8x1xf32> to vector<1x8x32xf32>
    %200 = arith.divf %190, %199 : vector<1x8x32xf32>
    %201 = vector.shape_cast %2 : vector<1x32xf32> to vector<1x1x32xf32>
    %202 = vector.broadcast %201 : vector<1x1x32xf32> to vector<1x8x32xf32>
    %203 = arith.mulf %200, %202 : vector<1x8x32xf32>
    %c0_48 = arith.constant 0 : index
    %c0_49 = arith.constant 0 : index
    %c0_50 = arith.constant 0 : index
    %204 = vector.load %arg9[%c0_48, %c0_49, %c0_50] : memref<1x8x32xf32, #tpu.memory_space<vmem>>, vector<1x8x32xf32>
    tpu.vector_store %arg9[%c0_48, %c0_49, %c0_50], %203 {strides = array<i32>} : memref<1x8x32xf32, #tpu.memory_space<vmem>>, vector<1x8x32xf32>,
    return
  }
  func.func @transform_0(%arg0: i32) -> (i32, i32, i32) {
    %c0_i32 = arith.constant 0 : i32
    %c0_i32_0 = arith.constant 0 : i32
    %c0_i32_1 = arith.constant 0 : i32
    return %arg0, %c0_i32, %c0_i32_0 : i32, i32, i32
  }
  func.func @transform_1(%arg0: i32) -> (i32, i32) {
    %c0_i32 = arith.constant 0 : i32
    %c0_i32_0 = arith.constant 0 : i32
    %c0_i32_1 = arith.constant 0 : i32
    return %c0_i32, %c0_i32_0 : i32, i32
  }
  func.func @transform_2(%arg0: i32) -> (i32, i32) {
    %c0_i32 = arith.constant 0 : i32
    %c0_i32_0 = arith.constant 0 : i32
    %c0_i32_1 = arith.constant 0 : i32
    return %c0_i32, %c0_i32_0 : i32, i32
  }
  func.func @transform_3(%arg0: i32) -> (i32, i32) {
    %c0_i32 = arith.constant 0 : i32
    %c0_i32_0 = arith.constant 0 : i32
    %c0_i32_1 = arith.constant 0 : i32
    return %c0_i32, %c0_i32_0 : i32, i32
  }
  func.func @transform_4(%arg0: i32) -> (i32, i32) {
    %c0_i32 = arith.constant 0 : i32
    %c0_i32_0 = arith.constant 0 : i32
    %c0_i32_1 = arith.constant 0 : i32
    return %c0_i32, %c0_i32_0 : i32, i32
  }
  func.func @transform_5(%arg0: i32) -> (i32, i32) {
    %c0_i32 = arith.constant 0 : i32
    %c0_i32_0 = arith.constant 0 : i32
    %c0_i32_1 = arith.constant 0 : i32
    return %c0_i32, %c0_i32_0 : i32, i32
  }
  func.func @transform_6(%arg0: i32) -> (i32, i32) {
    %c0_i32 = arith.constant 0 : i32
    %c0_i32_0 = arith.constant 0 : i32
    %c0_i32_1 = arith.constant 0 : i32
    return %c0_i32, %c0_i32_0 : i32, i32
  }
  func.func @transform_7(%arg0: i32) -> (i32, i32) {
    %c0_i32 = arith.constant 0 : i32
    %c0_i32_0 = arith.constant 0 : i32
    %c0_i32_1 = arith.constant 0 : i32
    return %c0_i32, %c0_i32_0 : i32, i32
  }
  func.func @transform_8(%arg0: i32) -> (i32, i32, i32) {
    %c0_i32 = arith.constant 0 : i32
    %c0_i32_0 = arith.constant 0 : i32
    %c0_i32_1 = arith.constant 0 : i32
    return %arg0, %c0_i32, %c0_i32_0 : i32, i32, i32
  }
}

</mosaic_0001>

<bundles_post_ra>
// kernel: tpu_custom_call.1
= control target key start
LH: loop header
LB: loop body
LE: loop exit
PB: predicated region body
PF: predicated region fallthrough
CT: control target
= control target key end

     0   :  { %s1854_s0 = inlined_call_operand.hbm [shape: f32[2,8,32], index: 0, kind: input, shape index: {}]   ;;  %s1855_s1 = inlined_call_operand.hbm [shape: bf16[32,96], index: 1, kind: input, shape index: {}]   ;;  %s1856_s2 = inlined_call_operand.hbm [shape: bf16[32,32], index: 2, kind: input, shape index: {}]   ;;  %s1857_s3 = inlined_call_operand.vmem [shape: f32[1,32], index: 3, kind: input, shape index: {}]   ;;  %s1858_s4 = inlined_call_operand.vmem [shape: f32[1,32], index: 4, kind: input, shape index: {}]   ;;  %s1859_s5 = inlined_call_operand.vmem [shape: f32[1,32], index: 5, kind: input, shape index: {}]   ;;  %s1860_s6 = inlined_call_operand.hbm [shape: f32[8,8], index: 6, kind: input, shape index: {}]   ;;  %s1861_s7 = inlined_call_operand.hbm [shape: f32[8,8], index: 7, kind: input, shape index: {}]   ;;  %s1862_s8 = inlined_call_operand.hbm [shape: f32[2,8,32], index: 8, kind: output, shape index: {}]  }
   0x1   :  { %1863 = sst [smem:[#allocation17_spill]] %s1855_s1 }
   0x2   :  { %1864 = sst [smem:[#allocation18_spill]] %s1856_s2 }
   0x3   :  { %1865 = sst [smem:[#allocation19_spill]] %s1860_s6 }
   0x4   :  { %13 = vsyncpa [#allocation4], 0 }
   0x5   :  { %15 = vsyncpa [#allocation4 + $0x1], 0 }
   0x6   :  { %16 = vsyncpa [#allocation7], 0 }
   0x7   :  { %17 = vsyncpa [#allocation10], 0 }
   0x8   :  { %18 = vsyncpa [#allocation5], 0 }
   0x9   :  { %20 = vsyncpa [#allocation5 + $0x1], 0  ;;  %s1564_s27 = smov 0   ;;  %s1566_s28 = smov 0  }
   0xa   :  { %s1568_s29 = smov 0   ;;  %s1570_s30 = smov 0  }
   0xb LB: > { %s1866_s1 = sld [smem:[#allocation17_spill]]  ;;  %s1588_s12 = sadd.s32 4294967295, %s1485_s30   ;;  %s1485_s30 = sphi %s1570_s30, %s1880_s30   ;;  %s1481_s29 = sphi %s1568_s29, %s1879_s29   ;;  %s1477_s28 = sphi %s1566_s28, %s1878_s28   ;;  %s1473_s27 = sphi %s1564_s27, %s1877_s27  }
   0xc   : > { %p1068_p0 = scmp.ge.s32.totalorder %s1485_s30, 1  ;;  %p47_p1 = scmp.eq.s32.totalorder %s1588_s12, 0 }
   0xd   : > { %p230_p2 = scmp.lt.s32.totalorder %s1485_s30, 3  ;;  %s1487_s14 = smov [#allocation6]  }
   0xe   : > { %s243_s15 = sshll.u32 %s1487_s14, 4  ;;  %s1868_s6 = sld [smem:[#allocation19_spill]]  ;;  %s244_s15 = int_to_ptr.vmem [resolvable:$true] %s243_s15 }
   0xf   : > { %p1593_p3 = pnand %p1068_p0, %p230_p2  ;;  %s1870_s2 = sld [smem:[#allocation18_spill]] }
  0x10   : > { %s1488_s23 = smov [#allocation9]   ;;  %s1489_s25 = smov 64  }
  0x11   : > { %s241_s11 = sshll.u32 %s1866_s1, 4  ;;  %p1137_p4 = pneg %p1593_p3  ;;  %s242_s11 = int_to_ptr.hbm [resolvable:$true] %s241_s11 }
  0x12   : > { %s281_s24 = sshll.u32 %s1488_s23, 4  ;;  %s1490_s26 = smov 4   ;;  %s282_s24 = int_to_ptr.vmem [resolvable:$true] %s281_s24 }
  0x13   : > { %p1605_p6 = pnand %p1137_p4, %p47_p1  ;;  %s291_s14 = sshll.u32 %s1861_s7, 4  ;;  %s292_s14 = int_to_ptr.hbm [resolvable:$true] %s291_s14 }
  0x14   : > { %s279_s18 = sshll.u32 %s1868_s6, 4  ;;  %s1491_s16 = smov [#allocation8]   ;;  %s280_s18 = int_to_ptr.hbm [resolvable:$true] %s279_s18 }
  0x15   : > { %s255_s22 = sshll.u32 %s1870_s2, 4  ;;  %s257_s17 = sshll.u32 %s1491_s16, 4  ;;  %s256_s22 = int_to_ptr.hbm [resolvable:$true] %s255_s22  ;;  %s258_s17 = int_to_ptr.vmem [resolvable:$true] %s257_s17 }
  0x16   : > { %1140 = dma.hbm_to_vmem [thread:$0]  (!%p1605_p6), %s242_s11, 256, %s244_s15, [#allocation7], %s1489_s25, %s1489_s25, %s1490_s26  }
  0x17   : > { %1146 = dma.hbm_to_vmem [thread:$0]  (!%p1605_p6), %s280_s18, 128, %s282_s24, [#allocation10]  }
  0x18   : > { %1143 = dma.hbm_to_vmem [thread:$0]  (!%p1605_p6), %s256_s22, 256, %s258_s17, [#allocation7], %s1489_s25, %s1489_s25, %s1490_s26  }
  0x19   : > { %s1492_s11 = smov [#allocation11]   ;;  %s1067_s18 = sadd.s32 4294967294, %s1485_s30  }
  0x1a   : > { %s293_s15 = sshll.u32 %s1492_s11, 4  ;;  %s1625_s20 = sadd.s32 1, %s1485_s30   ;;  %s294_s15 = int_to_ptr.vmem [resolvable:$true] %s293_s15 }
  0x1b   : > { %1149 = dma.hbm_to_vmem [thread:$0]  (!%p1605_p6), %s292_s14, 128, %s294_s15, [#allocation10]  }
  0x1c   : > { %s30_s21 = ssub.s32 %s1485_s30, %s1625_s20  ;;  %s33_s23 = sadd.s32 1, %s1481_s29 }
  0x1d   : > { %p31_p7 = scmp.eq.s32.totalorder %s30_s21, 0  ;;  %p40_p8 = scmp.ne.s32.totalorder %s1481_s29, %s1477_s28 }
  0x1e   : > { %p41_p9 = scmp.eq.s32.totalorder %s1485_s30, 0  ;;  %p46_p10 = scmp.ne.s32.totalorder %s1477_s28, %s1473_s27 }
  0x1f   : > { %s1636_s22 = scalar_select %p31_p7, %s1481_s29, %s33_s23  }
  0x20   : > { %p1638_p11 = por %p41_p9, %p40_p8  ;;  %p1644_p12 = por %p47_p1, %p46_p10 }
  0x21   : > { %p217_p13 = scmp.eq.s32.totalorder %s1588_s12, 1  ;;  %p223_p0 = scmp.eq.s32.totalorder %s1067_s18, 1 }
  0x22   : > { %p1162_p2 = scmp.lt.s32.totalorder %s1485_s30, 2  ;;  %s304_s25 = sand.u32 1, %s1481_s29  }
  0x23   : > { %p1651_p4 = por %p217_p13, %p40_p8  ;;  %p1655_p6 = por %p223_p0, %p46_p10 }
  0x24   : > { %s1074_s10 = sshll.u32 %s304_s25, 3  ;;  %s1075_s14 = sshll.u32 %s1485_s30, 3 }
  0x25   : > { %s312_s11 = scalar_lea.hbm %s1854_s0, %s1075_s14  ;;  %s308_s15 = scalar_lea.vmem [#allocation3], %s1074_s10 }
  0x26   : > { %s316_s21 = sshll.u32 %s308_s15, 4  ;;  %s314_s23 = sshll.u32 %s312_s11, 4  ;;  %s317_s21 = int_to_ptr.vmem [resolvable:$true] %s316_s21  ;;  %s315_s23 = int_to_ptr.hbm [resolvable:$true] %s314_s23 }
  0x27   : > { %p1665_p7 = pnand %p1162_p2, %p1638_p11  ;;  %s305_s1 = scalar_lea.sflag [#allocation4], %s304_s25 }
  0x28   : > { %s1381_s2 = sshra.s32 %s315_s23, 4  ;;  %s1388_s16 = scalar_lea.hbm %s1854_s0, 16  ;;  %s1382_s2 = int_to_ptr.hbm [resolvable:$true] %s1381_s2 }
  0x29   : > { %s1383_s6 = scalar_lea.hbm %s1382_s2, 8  ;;  %p1385_p9 = pneg %p1665_p7 }
  0x2a   : > { %p1384_p8 = scmp.ne.s32.totalorder %s1382_s2, %s1383_s6  ;;  %p1389_p11 = scmp.lt.s32.totalorder %s1382_s2, %s1854_s0 }
  0x2b   : > { %p1390_p0 = scmp.lt.s32.totalorder %s1388_s16, %s1383_s6 }
  0x2c   : > { %p1386_p10 = pnand %p1385_p9, %p1384_p8 }
  0x2d   : > { %p1391_p2 = por %p1390_p0, %p1389_p11 }
  0x2e   : > { %p1387_p13 = pneg %p1386_p10 }
  0x30   : > { %p1392_p5 = pnand %p1391_p2, %p1387_p13 }
  0x32   : > { %1395 = shalt.err (!%p1392_p5)
}
  0x33   : > { %1153 = dma.hbm_to_vmem [thread:$0]  (!%p1665_p7), %s315_s23, 128, %s317_s21, %s305_s1  }
  0x34   : > { %325 = sbr.rel (%p1593_p3) target bundleno = 1709 (0x6ad), region = 52  ;;  %s1682_s25 = sand.u32 (!%p1593_p3), 1, %s1477_s28  }
  0x35   : > { %s1077_s11 = sshll.u32 (!%p1593_p3), %s1682_s25, 3  ;;  %s328_s15 = scalar_lea.sflag (!%p1593_p3), [#allocation4], %s1682_s25 }
  0x36   : > { %s331_s2 = scalar_lea.vmem (!%p1593_p3), [#allocation3], %s1077_s11 }
  0x39   : > { %1456 = dma.done.wait (%p1644_p12), %s328_s15, 128  }
  0x3a   : > { %1458 = vsyncadd (%p1644_p12), %s328_s15, 4294967168 }
  0x3b   : > { %1460 = dma.done.wait (%p47_p1), [#allocation7], 512  }
  0x3c   : > { %1462 = vsyncadd (%p47_p1), [#allocation7], 4294966784 }
  0x3d   : > { %1464 = dma.done.wait (%p47_p1), [#allocation10], 256  }
  0x3e   : > { %1466 = vsyncadd (%p47_p1), [#allocation10], 4294967040  ;;  %v1700_v0 = vld [vmem:[%s331_s2] sm:$0xff]  ;;  %vm390_vm0 = vcmask 261120   ;;  %v1493_v3 = vmov 32.0   ;;  %v1114_v6 = vld [vmem:[#allocation6 + $0x8] sm:$0xff] }
  0x3f   : > { %v389_v1 = vmul.f32 %v1700_v0, %v1700_v0  ;;  %1235 = vrcp.f32 %v1493_v3  ;;  %460 = vmatpush.bf16.msra.mxu0 %v1114_v6  ;;  %v1113_v7 = vld [vmem:[#allocation6] sm:$0xff]  ;;  %v1232_v34 = vld [vmem:[%s1858_s4] ss:$0 sm:$0xff]  ;;  %s1494_s13 = smov 124   ;;  %s1495_s19 = smov 100   ;;  %vm483_vm8 = vcmask 31744  }
  0x40   : > { %s1496_s21 = smov 92   ;;  %s1497_s23 = smov 116   ;;  %v1722_v41 = vld [vmem:[#allocation9] sm:$0xff]  ;;  %v1730_v43 = vld [vmem:[#allocation11] sm:$0xff]  ;;  %vm512_vm9 = vcmask 64512   ;;  %vm553_vm11 = vcmask 1043456  }
  0x41   : > { %v391_v2 = vsel %vm390_vm0, %v389_v1, 0.0  ;;  %s1498_s18 = smov 84   ;;  %s1499_s10 = smov 68   ;;  %vm571_vm12 = vcmask 60416   ;;  %vm670_vm13 = vcmask 126016   ;;  %vm769_vm14 = vcmask 191616  }
  0x42   : > { %392 = vadd.xlane.f32.xlu0 %v391_v2  ;;  %s1500_s14 = smov 76   ;;  %s1501_s16 = smov 32   ;;  %vm865_vm15 = vcmask 257216  }
  0x43   : > { %461 = vmatpush.bf16.msra.mxu0 %v1113_v7  ;;  %s1502_s17 = smov 108   ;;  %s1503_s24 = smov 40  }
  0x44   : > { %s1504_s15 = smov 8   ;;  %s1505_s2 = smov 24  }
  0x45   : > { %v1236_v4 = vpop.eup %1235  ;;  %s1506_s1 = smov 48   ;;  %s1507_s6 = smov 56  }
  0x46   : > { %v395_v5 = vmul.f32 32.0, %v1236_v4  ;;  %vm399_vm1 = vweird.f32 %v1236_v4 }
  0x48   : > { %v396_v8 = vsub.f32 1.0, %v395_v5 }
  0x4a   : > { %v397_v9 = vmul.f32 %v1236_v4, %v396_v8 }
  0x4c   : > { %v398_v10 = vadd.f32 %v1236_v4, %v397_v9 }
  0x4e   : > { %v1705_v11 = vsel %vm399_vm1, %v1236_v4, %v398_v10 }
  0xb5   : > { %v393_v12 = vpop.xlane.xlu0 %392 }
  0xb6   : > { %v401_v13 = vmul.f32 %v1705_v11, %v393_v12 }
  0xb8   : > { %v402_v14 = vadd.f32 1e-07, %v401_v13 }
  0xba   : > { %1237 = vrsqrt.f32 %v402_v14  ;;  %vm410_vm2 = vcmp.eq.f32.partialorder %v402_v14, inf  ;;  %v413_v22 = vand.u32 2147483648, %v402_v14  ;;  %vm412_vm3 = vcmp.eq.f32.partialorder %v402_v14, 0.0 }
  0xc0   : > { %v1238_v15 = vpop.eup %1237 }
  0xc1   : > { %v404_v16 = vmul.f32 %v1238_v15, %v402_v14 }
  0xc3   : > { %v405_v17 = vmul.f32 %v1238_v15, %v404_v16 }
  0xc5   : > { %v406_v18 = vmul.f32 0.5, %v405_v17 }
  0xc7   : > { %v407_v19 = vsub.f32 1.5, %v406_v18 }
  0xc9   : > { %v408_v20 = vmul.f32 %v1238_v15, %v407_v19 }
  0xcb   : > { %v409_v21 = vmul.f32 %v408_v20, %v402_v14 }
  0xcd   : > { %v411_v23 = vsel %vm410_vm2, %v402_v14, %v409_v21 }
  0xce   : > { %v414_v24 = vsel %vm412_vm3, %v413_v22, %v411_v23 }
  0xcf   : > { %1239 = vrcp.f32 %v414_v24  ;;  %v426_v28 = vand.u32 2147483648, %v414_v24  ;;  %v424_v30 = vand.u32 2147483647, %v414_v24  ;;  %vm420_vm5 = vweird.f32 %v414_v24 }
  0xd1   : > { %v427_v32 = vor.u32 1.1754944e-38, %v426_v28  ;;  %vm425_vm7 = vcmp.eq.f32.partialorder %v424_v30, 8.507059e+37 }
  0xd5   : > { %v1240_v25 = vpop.eup %1239 }
  0xd6   : > { %v416_v26 = vmul.f32 %v1240_v25, %v414_v24  ;;  %vm421_vm4 = vweird.f32 %v1240_v25 }
  0xd7   : > { %vm422_vm6 = vmor %vm420_vm5, %vm421_vm4 }
  0xd8   : > { %v417_v27 = vsub.f32 1.0, %v416_v26 }
  0xda   : > { %v418_v29 = vmul.f32 %v1240_v25, %v417_v27 }
  0xdc   : > { %v419_v31 = vadd.f32 %v1240_v25, %v418_v29 }
  0xde   : > { %v423_v33 = vsel %vm422_vm6, %v1240_v25, %v419_v31 }
  0xdf   : > { %v428_v35 = vsel %vm425_vm7, %v427_v32, %v423_v33 }
  0xe0   : > { %v429_v36 = vmul.f32 %v428_v35, %v1700_v0 }
  0xe2   : > { %v433_v37 = vmul.f32 %v1232_v34, %v429_v36 }
  0xe4   : > { %v434_v38 = vpack.c.bf16 %v433_v37, %v433_v37 }
  0xe6   : > { %1091 = vmatmul.msk.bf16.vlgmr.msra.gmra.mxu0 %vm390_vm0, %v434_v38 }
 0x163   : > { %v1713_v39 = vpop.f32.mrf.mxu0 }
 0x164   : > { %477 = vrot.lane.b32.xlu2 %v1713_v39, %s1494_s13  ;;  %496 = vrot.lane.b32.xlu1 %v1713_v39, %s1495_s19  ;;  %s1508_s13 = smov 16   ;;  %s1509_s19 = smov 4  }
 0x165   : > { %493 = vrot.lane.b32.xlu0 %v1713_v39, %s1496_s21  ;;  %s1510_s21 = smov 88  }
 0x16b   : > { %v465_v40 = vpop.f32.mrf.mxu0 }
 0x16c   : > { %577 = vrot.lane.b32.xlu2 %v1713_v39, %s1497_s23  ;;  %592 = vrot.lane.b32.xlu1 %v1713_v39, %s1498_s18  ;;  %s1511_s23 = smov 104   ;;  %s1512_s18 = smov 96  }
 0x174   : > { %787 = vrot.lane.b32.xlu2 %v1713_v39, %s1499_s10  ;;  %691 = vrot.lane.b32.xlu1 %v1713_v39, %s1500_s14  ;;  %s1513_s10 = smov 120   ;;  %s1514_s14 = smov 72  }
 0x17c   : > { %489 = vrot.lane.b32.xlu2 %v1722_v41, %s1501_s16  ;;  %676 = vrot.lane.b32.xlu1 %v1713_v39, %s1502_s17  ;;  %s1516_s17 = smov 112  }
 0x184   : > { %588 = vrot.lane.b32.xlu1 %v1722_v41, %s1503_s24 }
 0x1be   : > { %v1728_v42 = vpop.permute.xlu2 %477 }
 0x1c6   : > { %v578_v44 = vpop.permute.xlu2 %577 }
 0x1c7   : > { %v580_v45 = vsel %vm483_vm8, %v578_v44, %v1728_v42 }
 0x1c8   : > { %v581_v46 = vmul.f32 %v580_v45, %v1730_v43 }
 0x1ca   : > { %583 = vrot.lane.b32.xlu1 %v581_v46, %s1504_s15 }
 0x1ce   : > { %v788_v54 = vpop.permute.xlu2 %787 }
 0x1d2   : > { %771 = vrot.lane.b32.xlu1 %v1722_v41, %s1505_s2 }
 0x1d6   : > { %v497_v47 = vpop.permute.xlu1 %496  ;;  %v490_v2 = vpop.permute.xlu2 %489 }
 0x1d7   : > { %v494_v48 = vpop.permute.xlu0 %493  ;;  %v492_v15 = vmul.f32 %v490_v2, %v1713_v39  ;;  %v475_v2 = vmul.f32 %v1722_v41, %v1713_v39 }
 0x1d8   : > { %v499_v49 = vsel %vm483_vm8, %v494_v48, %v497_v47 }
 0x1d9   : > { %v500_v50 = vmul.f32 %v499_v49, %v1730_v43 }
 0x1db   : > { %502 = vrot.lane.b32.xlu0 %v500_v50, %s1501_s16  ;;  %s1515_s16 = smov 80  }
 0x1de   : > { %v593_v51 = vpop.permute.xlu1 %592 }
 0x1df   : > { %v595_v52 = vsel %vm483_vm8, %v593_v51, %v494_v48 }
 0x1e0   : > { %v596_v53 = vmul.f32 %v595_v52, %v1730_v43 }
 0x1e2   : > { %598 = vrot.lane.b32.xlu2 %v596_v53, %s1503_s24 }
 0x1e3   : > { %573 = vrot.lane.b32.xlu0 %v1722_v41, %s1504_s15 }
 0x1e6   : > { %v692_v55 = vpop.permute.xlu1 %691 }
 0x1e7   : > { %v694_v56 = vsel %vm483_vm8, %v692_v55, %v593_v51  ;;  %v790_v57 = vsel %vm483_vm8, %v788_v54, %v692_v55 }
 0x1e8   : > { %v695_v58 = vmul.f32 %v694_v56, %v1730_v43  ;;  %v791_v59 = vmul.f32 %v790_v57, %v1730_v43 }
 0x1ea   : > { %697 = vrot.lane.b32.xlu1 %v695_v58, %s1506_s1  ;;  %783 = vrot.lane.b32.xlu2 %v1722_v41, %s1507_s6 }
 0x1eb   : > { %793 = vrot.lane.b32.xlu0 %v791_v59, %s1507_s6 }
 0x1ee   : > { %v677_v60 = vpop.permute.xlu1 %676 }
 0x1ef   : > { %v775_v61 = vsel %vm483_vm8, %v497_v47, %v677_v60  ;;  %v679_v63 = vsel %vm483_vm8, %v677_v60, %v578_v44 }
 0x1f0   : > { %v776_v62 = vmul.f32 %v775_v61, %v1730_v43  ;;  %v680_v1 = vmul.f32 %v679_v63, %v1730_v43 }
 0x1f2   : > { %778 = vrot.lane.b32.xlu2 %v776_v62, %s1505_s2 }
 0x1f3   : > { %687 = vrot.lane.b32.xlu0 %v1722_v41, %s1506_s1 }
 0x1f6   : > { %v589_v3 = vpop.permute.xlu1 %588 }
 0x1f7   : > { %v591_v4 = vmul.f32 %v589_v3, %v1713_v39 }
 0x1fa   : > { %672 = vrot.lane.b32.xlu2 %v1722_v41, %s1508_s13 }
 0x1fb   : > { %682 = vrot.lane.b32.xlu0 %v680_v1, %s1508_s13 }
 0x202   : > { %480 = vrot.lane.b32.xlu2 %v1713_v39, %s1509_s19  ;;  %s1518_s19 = smov 64  }
 0x23c   : > { %v599_v5 = vpop.permute.xlu2 %598  ;;  %v584_v7 = vpop.permute.xlu1 %583 }
 0x23d   : > { %v601_v6 = vadd.f32 %v599_v5, %v591_v4 }
 0x23f   : > { %v602_v8 = vpack.c.bf16 %v601_v6, %v601_v6 }
 0x241   : > { %v609_v9 = vunpack.c.l.b16 %v602_v8  ;;  %v469_v8 = vlaneseq }
 0x243   : > { %v610_v10 = vpack.c.b16 %v609_v9, %v609_v9  ;;  %v470_v41 = vshrl.u32 %v469_v8, 7  ;;  %v472_v9 = vand.u32 127, %v469_v8 }
 0x244   : > { %v784_v12 = vpop.permute.xlu2 %783  ;;  %v772_v13 = vpop.permute.xlu1 %771 }
 0x245   : > { %611 = vrot.lane.b32.xlu0 %v610_v10, %s1510_s21  ;;  %v774_v14 = vmul.f32 %v772_v13, %v1713_v39  ;;  %v786_v30 = vmul.f32 %v784_v12, %v1713_v39  ;;  %vm473_vm10 = vcmp.ge.s32.totalorder %v470_v41, %v472_v9  ;;  %v1517_v10 = vmov -1e+30  }
 0x246   : > { %v474_v12 = vsel %vm473_vm10, 0.0, %v1517_v10 }
 0x24c   : > { %v779_v16 = vpop.permute.xlu2 %778 }
 0x24d   : > { %v781_v17 = vadd.f32 %v779_v16, %v774_v14  ;;  %v503_v18 = vpop.permute.xlu0 %502 }
 0x24e   : > { %v505_v19 = vadd.f32 %v503_v18, %v492_v15 }
 0x24f   : > { %v782_v20 = vpack.c.bf16 %v781_v17, %v781_v17 }
 0x250   : > { %v506_v21 = vpack.c.bf16 %v505_v19, %v505_v19 }
 0x251   : > { %v799_v22 = vunpack.c.l.b16 %v782_v20 }
 0x252   : > { %v508_v23 = vunpack.c.l.b16 %v506_v21 }
 0x253   : > { %v800_v24 = vpack.c.b16 %v799_v22, %v799_v22 }
 0x254   : > { %v509_v25 = vpack.c.b16 %v508_v23, %v508_v23  ;;  %v673_v46 = vpop.permute.xlu2 %672 }
 0x255   : > { %v574_v26 = vpop.permute.xlu0 %573  ;;  %801 = vrot.lane.b32.xlu0 %v800_v24, %s1511_s23  ;;  %v675_v48 = vmul.f32 %v673_v46, %v1713_v39 }
 0x256   : > { %v576_v27 = vmul.f32 %v574_v26, %v1713_v39  ;;  %510 = vrot.lane.b32.xlu1 %v509_v25, %s1512_s18  ;;  %v544_v26 = vpack.c.bf16 %v1713_v39, %v1713_v39 }
 0x258   : > { %v586_v28 = vadd.f32 %v584_v7, %v576_v27 }
 0x25a   : > { %v587_v29 = vpack.c.bf16 %v586_v28, %v586_v28  ;;  %v546_v28 = vunpack.c.l.b16 %v544_v26 }
 0x25c   : > { %v604_v31 = vunpack.c.l.b16 %v587_v29  ;;  %v698_v44 = vpop.permute.xlu1 %697  ;;  %v481_v57 = vpop.permute.xlu2 %480 }
 0x25d   : > { %v794_v32 = vpop.permute.xlu0 %793  ;;  %v484_v61 = vsel %vm483_vm8, %v1728_v42, %v481_v57 }
 0x25e   : > { %v796_v33 = vadd.f32 %v794_v32, %v786_v30  ;;  %v605_v34 = vpack.c.b16 %v604_v31, %v604_v31  ;;  %v485_v62 = vmul.f32 %v484_v61, %v1730_v43  ;;  %v547_v31 = vpack.c.b16 %v546_v28, %v546_v28  ;;  %v1115_v28 = vld [vmem:[#allocation8] sm:$0xff] }
 0x260   : > { %v797_v35 = vpack.c.bf16 %v796_v33, %v796_v33  ;;  %606 = vrot.lane.b32.xlu1 %v605_v34, %s1513_s10  ;;  %v486_v3 = vadd.f32 %v485_v62, %v475_v2 }
 0x262   : > { %v804_v36 = vunpack.c.l.b16 %v797_v35  ;;  %v487_v4 = vpack.c.bf16 %v486_v3, %v486_v3 }
 0x264   : > { %v805_v37 = vpack.c.b16 %v804_v36, %v804_v36 }
 0x265   : > { %v688_v38 = vpop.permute.xlu0 %687 }
 0x266   : > { %v690_v40 = vmul.f32 %v688_v38, %v1713_v39  ;;  %806 = vrot.lane.b32.xlu2 %v805_v37, %s1514_s14  ;;  %s944_s14 = scalar_lea.sflag [#allocation5], %s1682_s25 }
 0x268   : > { %v700_v45 = vadd.f32 %v698_v44, %v690_v40 }
 0x26a   : > { %v701_v47 = vpack.c.bf16 %v700_v45, %v700_v45 }
 0x26c   : > { %v708_v49 = vunpack.c.l.b16 %v701_v47 }
 0x26d   : > { %v683_v50 = vpop.permute.xlu0 %682 }
 0x26e   : > { %v685_v51 = vadd.f32 %v683_v50, %v675_v48  ;;  %v709_v52 = vpack.c.b16 %v708_v49, %v708_v49 }
 0x270   : > { %v686_v53 = vpack.c.bf16 %v685_v51, %v685_v51  ;;  %710 = vrot.lane.b32.xlu1 %v709_v52, %s1515_s16 }
 0x272   : > { %v703_v54 = vunpack.c.l.b16 %v686_v53 }
 0x274   : > { %v704_v55 = vpack.c.b16 %v703_v54, %v703_v54 }
 0x276   : > { %705 = vrot.lane.b32.xlu2 %v704_v55, %s1516_s17 }
 0x2b7   : > { %v612_v56 = vpop.permute.xlu0 %611 }
 0x2b8   : > { %v617_v58 = vsel %vm512_vm9, %v612_v56, 0 }
 0x2b9   : > { %626 = vmatpush.bf16.xpose.msra.mxu3 %v617_v58 }
 0x2c0   : > { %v807_v59 = vpop.permute.xlu2 %806 }
 0x2c1   : > { %v812_v60 = vsel %vm512_vm9, %v807_v59, 0 }
 0x2c2   : > { %821 = vmatpush.bf16.xpose.msrb.mxu3 %v812_v60 }
 0x2c7   : > { %v802_v6 = vpop.permute.xlu0 %801 }
 0x2c8   : > { %v511_v63 = vpop.permute.xlu1 %510 }
 0x2c9   : > { %v517_v1 = vsel %vm512_vm9, %v511_v63, 0 }
 0x2ca   : > { %526 = vmatpush.bf16.xpose.msra.mxu1 %v517_v1 }
 0x2d0   : > { %v706_v43 = vpop.permute.xlu2 %705 }
 0x2d1   : > { %1092 = vmatmul.msk.bf16.vlgmr.msra.gmra.mxu1 %vm512_vm9, %v487_v4 }
 0x2d2   : > { %v607_v5 = vpop.permute.xlu1 %606 }
 0x2d3   : > { %1094 = vmatmul.msk.bf16.vlgmr.msra.gmra.mxu3 %vm512_vm9, %v607_v5 }
 0x2e2   : > { %v711_v7 = vpop.permute.xlu1 %710 }
 0x2e3   : > { %1098 = vmatmul.msk.bf16.vlgmr.msrb.gmra.mxu3 %vm512_vm9, %v802_v6  ;;  %v716_v42 = vsel %vm512_vm9, %v711_v7, 0 }
 0x2e4   : > { %725 = vmatpush.bf16.xpose.msrb.mxu0 %v716_v42 }
 0x2eb   : > { %1096 = vmatmul.msk.bf16.vlgmr.msrb.gmra.mxu0 %vm512_vm9, %v706_v43 }
 0x34e   : > { %v528_v13 = vpop.f32.mrf.mxu1 }
 0x34f   : > { %v529_v14 = vadd.f32 %v528_v13, %v474_v12 }
 0x351   : > { %v532_v15 = vsel %vm512_vm9, %v529_v14, -inf }
 0x352   : > { %533 = vmax.xlane.f32.xlu0 %v532_v15 }
 0x356   : > { %v530_v16 = vpop.f32.mrf.mxu1  ;;  %v628_v17 = vpop.f32.mrf.mxu3 }
 0x357   : > { %v629_v18 = vadd.f32 %v628_v17, %v474_v12 }
 0x359   : > { %v632_v19 = vsel %vm512_vm9, %v629_v18, -inf }
 0x35a   : > { %633 = vmax.xlane.f32.xlu1 %v632_v19 }
 0x35e   : > { %v630_v20 = vpop.f32.mrf.mxu3 }
 0x366   : > { %v823_v21 = vpop.f32.mrf.mxu3 }
 0x367   : > { %v824_v22 = vadd.f32 %v823_v21, %v474_v12 }
 0x368   : > { %v727_v23 = vpop.f32.mrf.mxu0 }
 0x369   : > { %v728_v24 = vadd.f32 %v727_v23, %v474_v12  ;;  %v827_v25 = vsel %vm512_vm9, %v824_v22, -inf }
 0x36a   : > { %828 = vmax.xlane.f32.xlu2 %v827_v25 }
 0x36b   : > { %v731_v27 = vsel %vm512_vm9, %v728_v24, -inf }
 0x36c   : > { %732 = vmax.xlane.f32.xlu0 %v731_v27  ;;  %v1116_v27 = vld [vmem:[#allocation8 + $0x8] sm:$0xff] }
 0x36d   : > { %897 = vmatpush.bf16.msra.mxu0 %v1116_v27 }
 0x36e   : > { %v825_v29 = vpop.f32.mrf.mxu3 }
 0x370   : > { %v729_v30 = vpop.f32.mrf.mxu0 }
 0x371   : > { %898 = vmatpush.bf16.msra.mxu0 %v1115_v28 }
 0x373   : > { %548 = vrot.lane.b32.xlu1 %v547_v31, %s1518_s19 }
 0x37b   : > { %839 = vrot.lane.b32.xlu1 %v547_v31, %s1503_s24 }
 0x3c5   : > { %v534_v32 = vpop.xlane.xlu0 %533 }
 0x3c6   : > { %v535_v33 = vsub.f32 %v529_v14, %v534_v32  ;;  %v1233_v32 = vld [vmem:[%s1857_s3] ss:$0 sm:$0xff] }
 0x3c8   : > { %v536_v34 = vmul.f32 1.442695, %v535_v33 }
 0x3ca   : > { %1241 = vpow2.f32 %v536_v34 }
 0x3cd   : > { %v634_v39 = vpop.xlane.xlu1 %633 }
 0x3ce   : > { %v635_v40 = vsub.f32 %v629_v18, %v634_v39 }
 0x3d0   : > { %v1242_v35 = vpop.eup %1241  ;;  %v636_v46 = vmul.f32 1.442695, %v635_v40 }
 0x3d1   : > { %v538_v36 = vsel %vm512_vm9, %v1242_v35, 0.0 }
 0x3d2   : > { %539 = vadd.xlane.f32.xlu2 %v538_v36 }
 0x3dd   : > { %v829_v48 = vpop.xlane.xlu2 %828 }
 0x3de   : > { %v830_v50 = vsub.f32 %v824_v22, %v829_v48 }
 0x3df   : > { %v733_v37 = vpop.xlane.xlu0 %732 }
 0x3e0   : > { %v734_v38 = vsub.f32 %v728_v24, %v733_v37  ;;  %v831_v52 = vmul.f32 1.442695, %v830_v50 }
 0x3e2   : > { %v735_v44 = vmul.f32 1.442695, %v734_v38 }
 0x3e4   : > { %1243 = vpow2.f32 %v735_v44 }
 0x3e5   : > { %v549_v45 = vpop.permute.xlu1 %548  ;;  %1245 = vpow2.f32 %v636_v46 }
 0x3e6   : > { %v555_v47 = vsel %vm553_vm11, %v549_v45, 0  ;;  %1247 = vpow2.f32 %v831_v52 }
 0x3e7   : > { %564 = vmatpush.bf16.msra.mxu2 %v555_v47 }
 0x3ea   : > { %v1244_v49 = vpop.eup %1243  ;;  %644 = vrot.lane.b32.xlu2 %v547_v31, %s1507_s6 }
 0x3eb   : > { %v737_v51 = vsel %vm512_vm9, %v1244_v49, 0.0  ;;  %v1246_v53 = vpop.eup %1245 }
 0x3ec   : > { %738 = vadd.xlane.f32.xlu0 %v737_v51  ;;  %v638_v54 = vsel %vm512_vm9, %v1246_v53, 0.0  ;;  %v1248_v55 = vpop.eup %1247 }
 0x3ed   : > { %v833_v56 = vsel %vm512_vm9, %v1248_v55, 0.0  ;;  %v840_v61 = vpop.permute.xlu1 %839 }
 0x3ee   : > { %v845_v1 = vsel %vm553_vm11, %v840_v61, 0 }
 0x3f4   : > { %639 = vadd.xlane.f32.xlu0 %v638_v54 }
 0x3fc   : > { %834 = vadd.xlane.f32.xlu0 %v833_v56 }
 0x410   : > { %743 = vrot.lane.b32.xlu0 %v547_v31, %s1506_s1 }
 0x445   : > { %v540_v57 = vpop.xlane.xlu2 %539 }
 0x446   : > { %1249 = vrcp.f32 %v540_v57 }
 0x44c   : > { %v1250_v58 = vpop.eup %1249 }
 0x44d   : > { %v645_v59 = vpop.permute.xlu2 %644  ;;  %v542_v60 = vmul.f32 %v1250_v58, %v1242_v35 }
 0x44e   : > { %v650_v62 = vsel %vm553_vm11, %v645_v59, 0 }
 0x44f   : > { %659 = vmatpush.bf16.msrb.mxu2 %v650_v62  ;;  %v543_v63 = vpack.c.bf16 %v542_v60, %v542_v60  ;;  %v1234_v62 = vld [vmem:[%s1859_s5] ss:$0 sm:$0xff] }
 0x451   : > { %1093 = vmatmul.msk.bf16.vlgmr.msra.gmra.mxu2 %vm512_vm9, %v543_v63 }
 0x453   : > { %854 = vmatpush.bf16.msra.mxu2 %v845_v1 }
 0x45f   : > { %v739_v2 = vpop.xlane.xlu0 %738 }
 0x467   : > { %v640_v3 = vpop.xlane.xlu0 %639 }
 0x468   : > { %1251 = vrcp.f32 %v640_v3 }
 0x46e   : > { %v1252_v4 = vpop.eup %1251 }
 0x46f   : > { %v642_v5 = vmul.f32 %v1252_v4, %v1246_v53  ;;  %v835_v6 = vpop.xlane.xlu0 %834 }
 0x470   : > { %1253 = vrcp.f32 %v835_v6 }
 0x471   : > { %v643_v7 = vpack.c.bf16 %v642_v5, %v642_v5  ;;  %1255 = vrcp.f32 %v739_v2 }
 0x473   : > { %1095 = vmatmul.msk.bf16.vlgmr.msrb.gmra.mxu2 %vm512_vm9, %v643_v7 }
 0x476   : > { %v1254_v42 = vpop.eup %1253 }
 0x477   : > { %v837_v43 = vmul.f32 %v1254_v42, %v1248_v55  ;;  %v1256_v8 = vpop.eup %1255 }
 0x478   : > { %v741_v41 = vmul.f32 %v1256_v8, %v1244_v49 }
 0x479   : > { %v838_v9 = vpack.c.bf16 %v837_v43, %v837_v43 }
 0x47a   : > { %v742_v13 = vpack.c.bf16 %v741_v41, %v741_v41 }
 0x482   : > { %v744_v10 = vpop.permute.xlu0 %743 }
 0x483   : > { %1099 = vmatmul.msk.bf16.vlgmr.msra.gmra.mxu2 %vm512_vm9, %v838_v9  ;;  %v749_v12 = vsel %vm553_vm11, %v744_v10, 0 }
 0x484   : > { %758 = vmatpush.bf16.msrb.mxu1 %v749_v12 }
 0x487   : > { %1097 = vmatmul.msk.bf16.vlgmr.msrb.gmra.mxu1 %vm512_vm9, %v742_v13 }
 0x4d4   : > { %v566_v14 = vpop.f32.mrf.mxu2 }
 0x4d5   : > { %v570_v15 = vpack.c.bf16 %v566_v14, %v566_v14 }
 0x4d7   : > { %572 = vst.msk [vmem:[#allocation2] sm:$0xf] %vm571_vm12, %v570_v15 }
 0x4dc   : > { %v568_v16 = vpop.f32.mrf.mxu2 }
 0x4f6   : > { %v661_v17 = vpop.f32.mrf.mxu2 }
 0x4f7   : > { %v665_v18 = vpack.c.bf16 %v661_v17, %v661_v17 }
 0x4f9   : > { %667 = vrot.lane.b32.xlu2 %v665_v18, %s1504_s15 }
 0x4fe   : > { %v663_v19 = vpop.f32.mrf.mxu2 }
 0x504   : > { %v760_v20 = vpop.f32.mrf.mxu1 }
 0x505   : > { %v764_v21 = vpack.c.bf16 %v760_v20, %v760_v20 }
 0x506   : > { %v856_v22 = vpop.f32.mrf.mxu2 }
 0x507   : > { %v860_v23 = vpack.c.bf16 %v856_v22, %v856_v22  ;;  %766 = vrot.lane.b32.xlu1 %v764_v21, %s1508_s13 }
 0x509   : > { %862 = vrot.lane.b32.xlu2 %v860_v23, %s1505_s2  ;;  %s1110_s2 = sshll.u32 %s1588_s12, 3  ;;  %s384_s12 = scalar_lea.vmem [#allocation12], %s1077_s11 }
 0x50a   : > { %s954_s13 = scalar_lea.hbm %s1862_s8, %s1110_s2  ;;  %s956_s18 = sshll.u32 %s384_s12, 4  ;;  %s957_s18 = int_to_ptr.vmem [resolvable:$true] %s956_s18 }
 0x50b   : > { %s958_s10 = sshll.u32 %s954_s13, 4  ;;  %s1431_s11 = scalar_lea.hbm %s1862_s8, 16  ;;  %s959_s10 = int_to_ptr.hbm [resolvable:$true] %s958_s10 }
 0x50c   : > { %v762_v24 = vpop.f32.mrf.mxu1  ;;  %s1425_s16 = sshra.s32 %s959_s10, 4  ;;  %s1426_s16 = int_to_ptr.hbm [resolvable:$true] %s1425_s16 }
 0x50d   : > { %s1427_s17 = scalar_lea.hbm %s1426_s16, 8  ;;  %p1432_p12 = scmp.lt.s32.totalorder %s1426_s16, %s1862_s8 }
 0x50e   : > { %v858_v25 = vpop.f32.mrf.mxu2  ;;  %p1428_p1 = scmp.ne.s32.totalorder %s1426_s16, %s1427_s17  ;;  %p1433_p7 = scmp.lt.s32.totalorder %s1431_s11, %s1427_s17 }
 0x510   : > { %p1429_p3 = pnand %p1428_p1, %p1651_p4  ;;  %p1434_p8 = por %p1433_p7, %p1432_p12 }
 0x512   : > { %p1430_p5 = pneg %p1429_p3 }
 0x514   : > { %p1435_p9 = pnand %p1434_p8, %p1430_p5 }
 0x553   : > { %v668_v26 = vpop.permute.xlu2 %667 }
 0x554   : > { %671 = vst.msk [vmem:[#allocation2] sm:$0xf] %vm670_vm13, %v668_v26 }
 0x563   : > { %v863_v30 = vpop.permute.xlu2 %862 }
 0x579   : > { %v767_v29 = vpop.permute.xlu1 %766 }
 0x57a   : > { %770 = vst.msk [vmem:[#allocation2] sm:$0xf] %vm769_vm14, %v767_v29 }
 0x57b   : > { %866 = vst.msk [vmem:[#allocation2] sm:$0xf] %vm865_vm15, %v863_v30 }
 0x582   : > { %v867_v31 = vld [vmem:[#allocation2] sm:$0xf] }
 0x583   : > { %1108 = vmatmul.msk.bf16.vlgmr.msra.gmra.mxu0 %vm390_vm0, %v867_v31 }
 0x600   : > { %v900_v33 = vpop.f32.mrf.mxu0 }
 0x601   : > { %v901_v34 = vadd.f32 %v1233_v32, %v900_v33 }
 0x603   : > { %v904_v35 = vadd.f32 %v901_v34, %v1700_v0 }
 0x605   : > { %v905_v36 = vmul.f32 %v904_v35, %v904_v35 }
 0x607   : > { %v906_v39 = vsel %vm390_vm0, %v905_v36, 0.0 }
 0x608   : > { %v902_v37 = vpop.f32.mrf.mxu0  ;;  %907 = vadd.xlane.f32.xlu1 %v906_v39 }
 0x67b   : > { %v908_v38 = vpop.xlane.xlu1 %907 }
 0x67c   : > { %v909_v40 = vmul.f32 %v908_v38, %v1705_v11 }
 0x67e   : > { %v910_v44 = vadd.f32 1e-07, %v909_v40 }
 0x680   : > { %1257 = vrsqrt.f32 %v910_v44  ;;  %vm918_vm1 = vcmp.eq.f32.partialorder %v910_v44, inf  ;;  %v921_v0 = vand.u32 2147483648, %v910_v44  ;;  %vm920_vm2 = vcmp.eq.f32.partialorder %v910_v44, 0.0 }
 0x686   : > { %v1258_v45 = vpop.eup %1257 }
 0x687   : > { %v912_v46 = vmul.f32 %v1258_v45, %v910_v44 }
 0x689   : > { %v913_v47 = vmul.f32 %v1258_v45, %v912_v46 }
 0x68b   : > { %v914_v48 = vmul.f32 0.5, %v913_v47 }
 0x68d   : > { %v915_v49 = vsub.f32 1.5, %v914_v48 }
 0x68f   : > { %v916_v50 = vmul.f32 %v1258_v45, %v915_v49 }
 0x691   : > { %v917_v51 = vmul.f32 %v916_v50, %v910_v44 }
 0x693   : > { %v919_v52 = vsel %vm918_vm1, %v910_v44, %v917_v51 }
 0x694   : > { %v922_v53 = vsel %vm920_vm2, %v921_v0, %v919_v52 }
 0x695   : > { %1259 = vrcp.f32 %v922_v53  ;;  %v934_v56 = vand.u32 2147483648, %v922_v53  ;;  %v932_v58 = vand.u32 2147483647, %v922_v53  ;;  %vm928_vm4 = vweird.f32 %v922_v53 }
 0x697   : > { %v935_v60 = vor.u32 1.1754944e-38, %v934_v56  ;;  %vm933_vm6 = vcmp.eq.f32.partialorder %v932_v58, 8.507059e+37 }
 0x69b   : > { %v1260_v54 = vpop.eup %1259 }
 0x69c   : > { %v924_v55 = vmul.f32 %v1260_v54, %v922_v53  ;;  %vm929_vm3 = vweird.f32 %v1260_v54 }
 0x69d   : > { %vm930_vm5 = vmor %vm928_vm4, %vm929_vm3 }
 0x69e   : > { %v925_v11 = vsub.f32 1.0, %v924_v55 }
 0x6a0   : > { %v926_v57 = vmul.f32 %v1260_v54, %v925_v11 }
 0x6a2   : > { %v927_v59 = vadd.f32 %v1260_v54, %v926_v57 }
 0x6a4   : > { %v931_v61 = vsel %vm930_vm5, %v1260_v54, %v927_v59 }
 0x6a5   : > { %v936_v63 = vsel %vm933_vm6, %v935_v60, %v931_v61 }
 0x6a6   : > { %v937_v1 = vmul.f32 %v936_v63, %v904_v35 }
 0x6a8   : > { %v941_v2 = vmul.f32 %v1234_v62, %v937_v1 }
 0x6aa   : > { %942 = vst.msk [vmem:[%s384_s12] sm:$0xff] %vm390_vm0, %v941_v2 }
 0x6ab   : > { %1438 = shalt.err (!%p1435_p9)
}
 0x6ac   : > { %1135 = dma.vmem_to_hbm [thread:$0]  (%p1651_p4), %s957_s18, 128, %s959_s10, %s944_s14  }
 0x6ad PF: > { %s970_s25 = sand.u32 1, %s1473_s27   ;;  %p1876_p10 = scmp.ge.s32.totalorder %s1485_s30, 2 }
 0x6ae   : > { %s971_s1 = scalar_lea.sflag [#allocation5], %s970_s25 }
 0x6af   : > { %p1155_p13 = pnand %p1876_p10, %p1655_p6 }
 0x6b1   : > { %p1156_p11 = pneg %p1155_p13 }
 0x6b3   : > { %1468 = dma.done.wait (%p1156_p11), %s971_s1, 128  }
 0x6b4   : > { %1470 = vsyncadd (%p1156_p11), %s971_s1, 4294967168  ;;  %p23_p0 = scmp.ge.s32.totalorder %s1625_s20, 4   ;;  %s1877_s27 = smov %s1477_s28 }
 0x6b5   : > { %s1878_s28 = smov %s1481_s29  ;;  %s1879_s29 = smov %s1636_s22 }
 0x6b6   : > { %s1880_s30 = smov %s1625_s20  ;;  %25 = sbr.rel (!%p23_p0) target bundleno = 11 (0xb), region = 113 }
 0x6bb   :  { %977 = vsyncpa [#allocation4], 1 }
 0x6bc   :  { %979 = vsyncpa [#allocation4 + $0x1], 1 }
 0x6bd   :  { %980 = vsyncpa [#allocation7], 1 }
 0x6be   :  { %981 = vsyncpa [#allocation10], 1 }
 0x6bf   :  { %982 = vsyncpa [#allocation5], 1 }
 0x6c0   :  { %984 = vsyncpa [#allocation5 + $0x1], 1 }

// kernel: tpu_custom_call.1
= control target key start
LH: loop header
LB: loop body
LE: loop exit
PB: predicated region body
PF: predicated region fallthrough
CT: control target
= control target key end

     0   :  { %s1854_s0 = inlined_call_operand.hbm [shape: f32[2,8,32], index: 0, kind: input, shape index: {}]   ;;  %s1855_s1 = inlined_call_operand.hbm [shape: bf16[32,96], index: 1, kind: input, shape index: {}]   ;;  %s1856_s2 = inlined_call_operand.hbm [shape: bf16[32,32], index: 2, kind: input, shape index: {}]   ;;  %s1857_s3 = inlined_call_operand.vmem [shape: f32[1,32], index: 3, kind: input, shape index: {}]   ;;  %s1858_s4 = inlined_call_operand.vmem [shape: f32[1,32], index: 4, kind: input, shape index: {}]   ;;  %s1859_s5 = inlined_call_operand.vmem [shape: f32[1,32], index: 5, kind: input, shape index: {}]   ;;  %s1860_s6 = inlined_call_operand.hbm [shape: f32[8,8], index: 6, kind: input, shape index: {}]   ;;  %s1861_s7 = inlined_call_operand.hbm [shape: f32[8,8], index: 7, kind: input, shape index: {}]   ;;  %s1862_s8 = inlined_call_operand.hbm [shape: f32[2,8,32], index: 8, kind: output, shape index: {}]  }
   0x1   :  { %1863 = sst [smem:[#allocation17_spill]] %s1855_s1 }
   0x2   :  { %1864 = sst [smem:[#allocation18_spill]] %s1856_s2 }
   0x3   :  { %1865 = sst [smem:[#allocation19_spill]] %s1860_s6 }
   0x4   :  { %13 = vsyncpa [#allocation4], 0 }
   0x5   :  { %15 = vsyncpa [#allocation4 + $0x1], 0 }
   0x6   :  { %16 = vsyncpa [#allocation7], 0 }
   0x7   :  { %17 = vsyncpa [#allocation10], 0 }
   0x8   :  { %18 = vsyncpa [#allocation5], 0 }
   0x9   :  { %20 = vsyncpa [#allocation5 + $0x1], 0  ;;  %s1564_s27 = smov 0   ;;  %s1566_s28 = smov 0  }
   0xa   :  { %s1568_s29 = smov 0   ;;  %s1570_s30 = smov 0  }
   0xb LB: > { %s1866_s1 = sld [smem:[#allocation17_spill]]  ;;  %s1588_s12 = sadd.s32 4294967295, %s1485_s30   ;;  %s1485_s30 = sphi %s1570_s30, %s1880_s30   ;;  %s1481_s29 = sphi %s1568_s29, %s1879_s29   ;;  %s1477_s28 = sphi %s1566_s28, %s1878_s28   ;;  %s1473_s27 = sphi %s1564_s27, %s1877_s27  }
   0xc   : > { %p1068_p0 = scmp.ge.s32.totalorder %s1485_s30, 1  ;;  %p47_p1 = scmp.eq.s32.totalorder %s1588_s12, 0 }
   0xd   : > { %p230_p2 = scmp.lt.s32.totalorder %s1485_s30, 3  ;;  %s1487_s14 = smov [#allocation6]  }
   0xe   : > { %s243_s15 = sshll.u32 %s1487_s14, 4  ;;  %s1868_s6 = sld [smem:[#allocation19_spill]]  ;;  %s244_s15 = int_to_ptr.vmem [resolvable:$true] %s243_s15 }
   0xf   : > { %p1593_p3 = pnand %p1068_p0, %p230_p2  ;;  %s1870_s2 = sld [smem:[#allocation18_spill]] }
  0x10   : > { %s1488_s23 = smov [#allocation9]   ;;  %s1489_s25 = smov 64  }
  0x11   : > { %s241_s11 = sshll.u32 %s1866_s1, 4  ;;  %p1137_p4 = pneg %p1593_p3  ;;  %s242_s11 = int_to_ptr.hbm [resolvable:$true] %s241_s11 }
  0x12   : > { %s281_s24 = sshll.u32 %s1488_s23, 4  ;;  %s1490_s26 = smov 4   ;;  %s282_s24 = int_to_ptr.vmem [resolvable:$true] %s281_s24 }
  0x13   : > { %p1605_p6 = pnand %p1137_p4, %p47_p1  ;;  %s291_s14 = sshll.u32 %s1861_s7, 4  ;;  %s292_s14 = int_to_ptr.hbm [resolvable:$true] %s291_s14 }
  0x14   : > { %s279_s18 = sshll.u32 %s1868_s6, 4  ;;  %s1491_s16 = smov [#allocation8]   ;;  %s280_s18 = int_to_ptr.hbm [resolvable:$true] %s279_s18 }
  0x15   : > { %s255_s22 = sshll.u32 %s1870_s2, 4  ;;  %s257_s17 = sshll.u32 %s1491_s16, 4  ;;  %s256_s22 = int_to_ptr.hbm [resolvable:$true] %s255_s22  ;;  %s258_s17 = int_to_ptr.vmem [resolvable:$true] %s257_s17 }
  0x16   : > { %1140 = dma.hbm_to_vmem [thread:$0]  (!%p1605_p6), %s242_s11, 256, %s244_s15, [#allocation7], %s1489_s25, %s1489_s25, %s1490_s26  }
  0x17   : > { %1146 = dma.hbm_to_vmem [thread:$0]  (!%p1605_p6), %s280_s18, 128, %s282_s24, [#allocation10]  }
  0x18   : > { %1143 = dma.hbm_to_vmem [thread:$0]  (!%p1605_p6), %s256_s22, 256, %s258_s17, [#allocation7], %s1489_s25, %s1489_s25, %s1490_s26  }
  0x19   : > { %s1492_s11 = smov [#allocation11]   ;;  %s1067_s18 = sadd.s32 4294967294, %s1485_s30  }
  0x1a   : > { %s293_s15 = sshll.u32 %s1492_s11, 4  ;;  %s1625_s20 = sadd.s32 1, %s1485_s30   ;;  %s294_s15 = int_to_ptr.vmem [resolvable:$true] %s293_s15 }
  0x1b   : > { %1149 = dma.hbm_to_vmem [thread:$0]  (!%p1605_p6), %s292_s14, 128, %s294_s15, [#allocation10]  }
  0x1c   : > { %s30_s21 = ssub.s32 %s1485_s30, %s1625_s20  ;;  %s33_s23 = sadd.s32 1, %s1481_s29 }
  0x1d   : > { %p31_p7 = scmp.eq.s32.totalorder %s30_s21, 0  ;;  %p40_p8 = scmp.ne.s32.totalorder %s1481_s29, %s1477_s28 }
  0x1e   : > { %p41_p9 = scmp.eq.s32.totalorder %s1485_s30, 0  ;;  %p46_p10 = scmp.ne.s32.totalorder %s1477_s28, %s1473_s27 }
  0x1f   : > { %s1636_s22 = scalar_select %p31_p7, %s1481_s29, %s33_s23  }
  0x20   : > { %p1638_p11 = por %p41_p9, %p40_p8  ;;  %p1644_p12 = por %p47_p1, %p46_p10 }
  0x21   : > { %p217_p13 = scmp.eq.s32.totalorder %s1588_s12, 1  ;;  %p223_p0 = scmp.eq.s32.totalorder %s1067_s18, 1 }
  0x22   : > { %p1162_p2 = scmp.lt.s32.totalorder %s1485_s30, 2  ;;  %s304_s25 = sand.u32 1, %s1481_s29  }
  0x23   : > { %p1651_p4 = por %p217_p13, %p40_p8  ;;  %p1655_p6 = por %p223_p0, %p46_p10 }
  0x24   : > { %s1074_s10 = sshll.u32 %s304_s25, 3  ;;  %s1075_s14 = sshll.u32 %s1485_s30, 3 }
  0x25   : > { %s312_s11 = scalar_lea.hbm %s1854_s0, %s1075_s14  ;;  %s308_s15 = scalar_lea.vmem [#allocation3], %s1074_s10 }
  0x26   : > { %s316_s21 = sshll.u32 %s308_s15, 4  ;;  %s314_s23 = sshll.u32 %s312_s11, 4  ;;  %s317_s21 = int_to_ptr.vmem [resolvable:$true] %s316_s21  ;;  %s315_s23 = int_to_ptr.hbm [resolvable:$true] %s314_s23 }
  0x27   : > { %p1665_p7 = pnand %p1162_p2, %p1638_p11  ;;  %s305_s1 = scalar_lea.sflag [#allocation4], %s304_s25 }
  0x28   : > { %s1381_s2 = sshra.s32 %s315_s23, 4  ;;  %s1388_s16 = scalar_lea.hbm %s1854_s0, 16  ;;  %s1382_s2 = int_to_ptr.hbm [resolvable:$true] %s1381_s2 }
  0x29   : > { %s1383_s6 = scalar_lea.hbm %s1382_s2, 8  ;;  %p1385_p9 = pneg %p1665_p7 }
  0x2a   : > { %p1384_p8 = scmp.ne.s32.totalorder %s1382_s2, %s1383_s6  ;;  %p1389_p11 = scmp.lt.s32.totalorder %s1382_s2, %s1854_s0 }
  0x2b   : > { %p1390_p0 = scmp.lt.s32.totalorder %s1388_s16, %s1383_s6 }
  0x2c   : > { %p1386_p10 = pnand %p1385_p9, %p1384_p8 }
  0x2d   : > { %p1391_p2 = por %p1390_p0, %p1389_p11 }
  0x2e   : > { %p1387_p13 = pneg %p1386_p10 }
  0x30   : > { %p1392_p5 = pnand %p1391_p2, %p1387_p13 }
  0x32   : > { %1395 = shalt.err (!%p1392_p5)
}
  0x33   : > { %1153 = dma.hbm_to_vmem [thread:$0]  (!%p1665_p7), %s315_s23, 128, %s317_s21, %s305_s1  }
  0x34   : > { %325 = sbr.rel (%p1593_p3) target bundleno = 1709 (0x6ad), region = 52  ;;  %s1682_s25 = sand.u32 (!%p1593_p3), 1, %s1477_s28  }
  0x35   : > { %s1077_s11 = sshll.u32 (!%p1593_p3), %s1682_s25, 3  ;;  %s328_s15 = scalar_lea.sflag (!%p1593_p3), [#allocation4], %s1682_s25 }
  0x36   : > { %s331_s2 = scalar_lea.vmem (!%p1593_p3), [#allocation3], %s1077_s11 }
  0x39   : > { %1456 = dma.done.wait (%p1644_p12), %s328_s15, 128  }
  0x3a   : > { %1458 = vsyncadd (%p1644_p12), %s328_s15, 4294967168 }
  0x3b   : > { %1460 = dma.done.wait (%p47_p1), [#allocation7], 512  }
  0x3c   : > { %1462 = vsyncadd (%p47_p1), [#allocation7], 4294966784 }
  0x3d   : > { %1464 = dma.done.wait (%p47_p1), [#allocation10], 256  }
  0x3e   : > { %1466 = vsyncadd (%p47_p1), [#allocation10], 4294967040  ;;  %v1700_v0 = vld [vmem:[%s331_s2] sm:$0xff]  ;;  %vm390_vm0 = vcmask 261120   ;;  %v1493_v3 = vmov 32.0   ;;  %v1114_v6 = vld [vmem:[#allocation6 + $0x8] sm:$0xff] }
  0x3f   : > { %v389_v1 = vmul.f32 %v1700_v0, %v1700_v0  ;;  %1235 = vrcp.f32 %v1493_v3  ;;  %460 = vmatpush.bf16.msra.mxu0 %v1114_v6  ;;  %v1113_v7 = vld [vmem:[#allocation6] sm:$0xff]  ;;  %v1232_v34 = vld [vmem:[%s1858_s4] ss:$0 sm:$0xff]  ;;  %s1494_s13 = smov 124   ;;  %s1495_s19 = smov 100   ;;  %vm483_vm8 = vcmask 31744  }
  0x40   : > { %s1496_s21 = smov 92   ;;  %s1497_s23 = smov 116   ;;  %v1722_v41 = vld [vmem:[#allocation9] sm:$0xff]  ;;  %v1730_v43 = vld [vmem:[#allocation11] sm:$0xff]  ;;  %vm512_vm9 = vcmask 64512   ;;  %vm553_vm11 = vcmask 1043456  }
  0x41   : > { %v391_v2 = vsel %vm390_vm0, %v389_v1, 0.0  ;;  %s1498_s18 = smov 84   ;;  %s1499_s10 = smov 68   ;;  %vm571_vm12 = vcmask 60416   ;;  %vm670_vm13 = vcmask 126016   ;;  %vm769_vm14 = vcmask 191616  }
  0x42   : > { %392 = vadd.xlane.f32.xlu0 %v391_v2  ;;  %s1500_s14 = smov 76   ;;  %s1501_s16 = smov 32   ;;  %vm865_vm15 = vcmask 257216  }
  0x43   : > { %461 = vmatpush.bf16.msra.mxu0 %v1113_v7  ;;  %s1502_s17 = smov 108   ;;  %s1503_s24 = smov 40  }
  0x44   : > { %s1504_s15 = smov 8   ;;  %s1505_s2 = smov 24  }
  0x45   : > { %v1236_v4 = vpop.eup %1235  ;;  %s1506_s1 = smov 48   ;;  %s1507_s6 = smov 56  }
  0x46   : > { %v395_v5 = vmul.f32 32.0, %v1236_v4  ;;  %vm399_vm1 = vweird.f32 %v1236_v4 }
  0x48   : > { %v396_v8 = vsub.f32 1.0, %v395_v5 }
  0x4a   : > { %v397_v9 = vmul.f32 %v1236_v4, %v396_v8 }
  0x4c   : > { %v398_v10 = vadd.f32 %v1236_v4, %v397_v9 }
  0x4e   : > { %v1705_v11 = vsel %vm399_vm1, %v1236_v4, %v398_v10 }
  0xb5   : > { %v393_v12 = vpop.xlane.xlu0 %392 }
  0xb6   : > { %v401_v13 = vmul.f32 %v1705_v11, %v393_v12 }
  0xb8   : > { %v402_v14 = vadd.f32 1e-07, %v401_v13 }
  0xba   : > { %1237 = vrsqrt.f32 %v402_v14  ;;  %vm410_vm2 = vcmp.eq.f32.partialorder %v402_v14, inf  ;;  %v413_v22 = vand.u32 2147483648, %v402_v14  ;;  %vm412_vm3 = vcmp.eq.f32.partialorder %v402_v14, 0.0 }
  0xc0   : > { %v1238_v15 = vpop.eup %1237 }
  0xc1   : > { %v404_v16 = vmul.f32 %v1238_v15, %v402_v14 }
  0xc3   : > { %v405_v17 = vmul.f32 %v1238_v15, %v404_v16 }
  0xc5   : > { %v406_v18 = vmul.f32 0.5, %v405_v17 }
  0xc7   : > { %v407_v19 = vsub.f32 1.5, %v406_v18 }
  0xc9   : > { %v408_v20 = vmul.f32 %v1238_v15, %v407_v19 }
  0xcb   : > { %v409_v21 = vmul.f32 %v408_v20, %v402_v14 }
  0xcd   : > { %v411_v23 = vsel %vm410_vm2, %v402_v14, %v409_v21 }
  0xce   : > { %v414_v24 = vsel %vm412_vm3, %v413_v22, %v411_v23 }
  0xcf   : > { %1239 = vrcp.f32 %v414_v24  ;;  %v426_v28 = vand.u32 2147483648, %v414_v24  ;;  %v424_v30 = vand.u32 2147483647, %v414_v24  ;;  %vm420_vm5 = vweird.f32 %v414_v24 }
  0xd1   : > { %v427_v32 = vor.u32 1.1754944e-38, %v426_v28  ;;  %vm425_vm7 = vcmp.eq.f32.partialorder %v424_v30, 8.507059e+37 }
  0xd5   : > { %v1240_v25 = vpop.eup %1239 }
  0xd6   : > { %v416_v26 = vmul.f32 %v1240_v25, %v414_v24  ;;  %vm421_vm4 = vweird.f32 %v1240_v25 }
  0xd7   : > { %vm422_vm6 = vmor %vm420_vm5, %vm421_vm4 }
  0xd8   : > { %v417_v27 = vsub.f32 1.0, %v416_v26 }
  0xda   : > { %v418_v29 = vmul.f32 %v1240_v25, %v417_v27 }
  0xdc   : > { %v419_v31 = vadd.f32 %v1240_v25, %v418_v29 }
  0xde   : > { %v423_v33 = vsel %vm422_vm6, %v1240_v25, %v419_v31 }
  0xdf   : > { %v428_v35 = vsel %vm425_vm7, %v427_v32, %v423_v33 }
  0xe0   : > { %v429_v36 = vmul.f32 %v428_v35, %v1700_v0 }
  0xe2   : > { %v433_v37 = vmul.f32 %v1232_v34, %v429_v36 }
  0xe4   : > { %v434_v38 = vpack.c.bf16 %v433_v37, %v433_v37 }
  0xe6   : > { %1091 = vmatmul.msk.bf16.vlgmr.msra.gmra.mxu0 %vm390_vm0, %v434_v38 }
 0x163   : > { %v1713_v39 = vpop.f32.mrf.mxu0 }
 0x164   : > { %477 = vrot.lane.b32.xlu2 %v1713_v39, %s1494_s13  ;;  %496 = vrot.lane.b32.xlu1 %v1713_v39, %s1495_s19  ;;  %s1508_s13 = smov 16   ;;  %s1509_s19 = smov 4  }
 0x165   : > { %493 = vrot.lane.b32.xlu0 %v1713_v39, %s1496_s21  ;;  %s1510_s21 = smov 88  }
 0x16b   : > { %v465_v40 = vpop.f32.mrf.mxu0 }
 0x16c   : > { %577 = vrot.lane.b32.xlu2 %v1713_v39, %s1497_s23  ;;  %592 = vrot.lane.b32.xlu1 %v1713_v39, %s1498_s18  ;;  %s1511_s23 = smov 104   ;;  %s1512_s18 = smov 96  }
 0x174   : > { %787 = vrot.lane.b32.xlu2 %v1713_v39, %s1499_s10  ;;  %691 = vrot.lane.b32.xlu1 %v1713_v39, %s1500_s14  ;;  %s1513_s10 = smov 120   ;;  %s1514_s14 = smov 72  }
 0x17c   : > { %489 = vrot.lane.b32.xlu2 %v1722_v41, %s1501_s16  ;;  %676 = vrot.lane.b32.xlu1 %v1713_v39, %s1502_s17  ;;  %s1516_s17 = smov 112  }
 0x184   : > { %588 = vrot.lane.b32.xlu1 %v1722_v41, %s1503_s24 }
 0x1be   : > { %v1728_v42 = vpop.permute.xlu2 %477 }
 0x1c6   : > { %v578_v44 = vpop.permute.xlu2 %577 }
 0x1c7   : > { %v580_v45 = vsel %vm483_vm8, %v578_v44, %v1728_v42 }
 0x1c8   : > { %v581_v46 = vmul.f32 %v580_v45, %v1730_v43 }
 0x1ca   : > { %583 = vrot.lane.b32.xlu1 %v581_v46, %s1504_s15 }
 0x1ce   : > { %v788_v54 = vpop.permute.xlu2 %787 }
 0x1d2   : > { %771 = vrot.lane.b32.xlu1 %v1722_v41, %s1505_s2 }
 0x1d6   : > { %v497_v47 = vpop.permute.xlu1 %496  ;;  %v490_v2 = vpop.permute.xlu2 %489 }
 0x1d7   : > { %v494_v48 = vpop.permute.xlu0 %493  ;;  %v492_v15 = vmul.f32 %v490_v2, %v1713_v39  ;;  %v475_v2 = vmul.f32 %v1722_v41, %v1713_v39 }
 0x1d8   : > { %v499_v49 = vsel %vm483_vm8, %v494_v48, %v497_v47 }
 0x1d9   : > { %v500_v50 = vmul.f32 %v499_v49, %v1730_v43 }
 0x1db   : > { %502 = vrot.lane.b32.xlu0 %v500_v50, %s1501_s16  ;;  %s1515_s16 = smov 80  }
 0x1de   : > { %v593_v51 = vpop.permute.xlu1 %592 }
 0x1df   : > { %v595_v52 = vsel %vm483_vm8, %v593_v51, %v494_v48 }
 0x1e0   : > { %v596_v53 = vmul.f32 %v595_v52, %v1730_v43 }
 0x1e2   : > { %598 = vrot.lane.b32.xlu2 %v596_v53, %s1503_s24 }
 0x1e3   : > { %573 = vrot.lane.b32.xlu0 %v1722_v41, %s1504_s15 }
 0x1e6   : > { %v692_v55 = vpop.permute.xlu1 %691 }
 0x1e7   : > { %v694_v56 = vsel %vm483_vm8, %v692_v55, %v593_v51  ;;  %v790_v57 = vsel %vm483_vm8, %v788_v54, %v692_v55 }
 0x1e8   : > { %v695_v58 = vmul.f32 %v694_v56, %v1730_v43  ;;  %v791_v59 = vmul.f32 %v790_v57, %v1730_v43 }
 0x1ea   : > { %697 = vrot.lane.b32.xlu1 %v695_v58, %s1506_s1  ;;  %783 = vrot.lane.b32.xlu2 %v1722_v41, %s1507_s6 }
 0x1eb   : > { %793 = vrot.lane.b32.xlu0 %v791_v59, %s1507_s6 }
 0x1ee   : > { %v677_v60 = vpop.permute.xlu1 %676 }
 0x1ef   : > { %v775_v61 = vsel %vm483_vm8, %v497_v47, %v677_v60  ;;  %v679_v63 = vsel %vm483_vm8, %v677_v60, %v578_v44 }
 0x1f0   : > { %v776_v62 = vmul.f32 %v775_v61, %v1730_v43  ;;  %v680_v1 = vmul.f32 %v679_v63, %v1730_v43 }
 0x1f2   : > { %778 = vrot.lane.b32.xlu2 %v776_v62, %s1505_s2 }
 0x1f3   : > { %687 = vrot.lane.b32.xlu0 %v1722_v41, %s1506_s1 }
 0x1f6   : > { %v589_v3 = vpop.permute.xlu1 %588 }
 0x1f7   : > { %v591_v4 = vmul.f32 %v589_v3, %v1713_v39 }
 0x1fa   : > { %672 = vrot.lane.b32.xlu2 %v1722_v41, %s1508_s13 }
 0x1fb   : > { %682 = vrot.lane.b32.xlu0 %v680_v1, %s1508_s13 }
 0x202   : > { %480 = vrot.lane.b32.xlu2 %v1713_v39, %s1509_s19  ;;  %s1518_s19 = smov 64  }
 0x23c   : > { %v599_v5 = vpop.permute.xlu2 %598  ;;  %v584_v7 = vpop.permute.xlu1 %583 }
 0x23d   : > { %v601_v6 = vadd.f32 %v599_v5, %v591_v4 }
 0x23f   : > { %v602_v8 = vpack.c.bf16 %v601_v6, %v601_v6 }
 0x241   : > { %v609_v9 = vunpack.c.l.b16 %v602_v8  ;;  %v469_v8 = vlaneseq }
 0x243   : > { %v610_v10 = vpack.c.b16 %v609_v9, %v609_v9  ;;  %v470_v41 = vshrl.u32 %v469_v8, 7  ;;  %v472_v9 = vand.u32 127, %v469_v8 }
 0x244   : > { %v784_v12 = vpop.permute.xlu2 %783  ;;  %v772_v13 = vpop.permute.xlu1 %771 }
 0x245   : > { %611 = vrot.lane.b32.xlu0 %v610_v10, %s1510_s21  ;;  %v774_v14 = vmul.f32 %v772_v13, %v1713_v39  ;;  %v786_v30 = vmul.f32 %v784_v12, %v1713_v39  ;;  %vm473_vm10 = vcmp.ge.s32.totalorder %v470_v41, %v472_v9  ;;  %v1517_v10 = vmov -1e+30  }
 0x246   : > { %v474_v12 = vsel %vm473_vm10, 0.0, %v1517_v10 }
 0x24c   : > { %v779_v16 = vpop.permute.xlu2 %778 }
 0x24d   : > { %v781_v17 = vadd.f32 %v779_v16, %v774_v14  ;;  %v503_v18 = vpop.permute.xlu0 %502 }
 0x24e   : > { %v505_v19 = vadd.f32 %v503_v18, %v492_v15 }
 0x24f   : > { %v782_v20 = vpack.c.bf16 %v781_v17, %v781_v17 }
 0x250   : > { %v506_v21 = vpack.c.bf16 %v505_v19, %v505_v19 }
 0x251   : > { %v799_v22 = vunpack.c.l.b16 %v782_v20 }
 0x252   : > { %v508_v23 = vunpack.c.l.b16 %v506_v21 }
 0x253   : > { %v800_v24 = vpack.c.b16 %v799_v22, %v799_v22 }
 0x254   : > { %v509_v25 = vpack.c.b16 %v508_v23, %v508_v23  ;;  %v673_v46 = vpop.permute.xlu2 %672 }
 0x255   : > { %v574_v26 = vpop.permute.xlu0 %573  ;;  %801 = vrot.lane.b32.xlu0 %v800_v24, %s1511_s23  ;;  %v675_v48 = vmul.f32 %v673_v46, %v1713_v39 }
 0x256   : > { %v576_v27 = vmul.f32 %v574_v26, %v1713_v39  ;;  %510 = vrot.lane.b32.xlu1 %v509_v25, %s1512_s18  ;;  %v544_v26 = vpack.c.bf16 %v1713_v39, %v1713_v39 }
 0x258   : > { %v586_v28 = vadd.f32 %v584_v7, %v576_v27 }
 0x25a   : > { %v587_v29 = vpack.c.bf16 %v586_v28, %v586_v28  ;;  %v546_v28 = vunpack.c.l.b16 %v544_v26 }
 0x25c   : > { %v604_v31 = vunpack.c.l.b16 %v587_v29  ;;  %v698_v44 = vpop.permute.xlu1 %697  ;;  %v481_v57 = vpop.permute.xlu2 %480 }
 0x25d   : > { %v794_v32 = vpop.permute.xlu0 %793  ;;  %v484_v61 = vsel %vm483_vm8, %v1728_v42, %v481_v57 }
 0x25e   : > { %v796_v33 = vadd.f32 %v794_v32, %v786_v30  ;;  %v605_v34 = vpack.c.b16 %v604_v31, %v604_v31  ;;  %v485_v62 = vmul.f32 %v484_v61, %v1730_v43  ;;  %v547_v31 = vpack.c.b16 %v546_v28, %v546_v28  ;;  %v1115_v28 = vld [vmem:[#allocation8] sm:$0xff] }
 0x260   : > { %v797_v35 = vpack.c.bf16 %v796_v33, %v796_v33  ;;  %606 = vrot.lane.b32.xlu1 %v605_v34, %s1513_s10  ;;  %v486_v3 = vadd.f32 %v485_v62, %v475_v2 }
 0x262   : > { %v804_v36 = vunpack.c.l.b16 %v797_v35  ;;  %v487_v4 = vpack.c.bf16 %v486_v3, %v486_v3 }
 0x264   : > { %v805_v37 = vpack.c.b16 %v804_v36, %v804_v36 }
 0x265   : > { %v688_v38 = vpop.permute.xlu0 %687 }
 0x266   : > { %v690_v40 = vmul.f32 %v688_v38, %v1713_v39  ;;  %806 = vrot.lane.b32.xlu2 %v805_v37, %s1514_s14  ;;  %s944_s14 = scalar_lea.sflag [#allocation5], %s1682_s25 }
 0x268   : > { %v700_v45 = vadd.f32 %v698_v44, %v690_v40 }
 0x26a   : > { %v701_v47 = vpack.c.bf16 %v700_v45, %v700_v45 }
 0x26c   : > { %v708_v49 = vunpack.c.l.b16 %v701_v47 }
 0x26d   : > { %v683_v50 = vpop.permute.xlu0 %682 }
 0x26e   : > { %v685_v51 = vadd.f32 %v683_v50, %v675_v48  ;;  %v709_v52 = vpack.c.b16 %v708_v49, %v708_v49 }
 0x270   : > { %v686_v53 = vpack.c.bf16 %v685_v51, %v685_v51  ;;  %710 = vrot.lane.b32.xlu1 %v709_v52, %s1515_s16 }
 0x272   : > { %v703_v54 = vunpack.c.l.b16 %v686_v53 }
 0x274   : > { %v704_v55 = vpack.c.b16 %v703_v54, %v703_v54 }
 0x276   : > { %705 = vrot.lane.b32.xlu2 %v704_v55, %s1516_s17 }
 0x2b7   : > { %v612_v56 = vpop.permute.xlu0 %611 }
 0x2b8   : > { %v617_v58 = vsel %vm512_vm9, %v612_v56, 0 }
 0x2b9   : > { %626 = vmatpush.bf16.xpose.msra.mxu3 %v617_v58 }
 0x2c0   : > { %v807_v59 = vpop.permute.xlu2 %806 }
 0x2c1   : > { %v812_v60 = vsel %vm512_vm9, %v807_v59, 0 }
 0x2c2   : > { %821 = vmatpush.bf16.xpose.msrb.mxu3 %v812_v60 }
 0x2c7   : > { %v802_v6 = vpop.permute.xlu0 %801 }
 0x2c8   : > { %v511_v63 = vpop.permute.xlu1 %510 }
 0x2c9   : > { %v517_v1 = vsel %vm512_vm9, %v511_v63, 0 }
 0x2ca   : > { %526 = vmatpush.bf16.xpose.msra.mxu1 %v517_v1 }
 0x2d0   : > { %v706_v43 = vpop.permute.xlu2 %705 }
 0x2d1   : > { %1092 = vmatmul.msk.bf16.vlgmr.msra.gmra.mxu1 %vm512_vm9, %v487_v4 }
 0x2d2   : > { %v607_v5 = vpop.permute.xlu1 %606 }
 0x2d3   : > { %1094 = vmatmul.msk.bf16.vlgmr.msra.gmra.mxu3 %vm512_vm9, %v607_v5 }
 0x2e2   : > { %v711_v7 = vpop.permute.xlu1 %710 }
 0x2e3   : > { %1098 = vmatmul.msk.bf16.vlgmr.msrb.gmra.mxu3 %vm512_vm9, %v802_v6  ;;  %v716_v42 = vsel %vm512_vm9, %v711_v7, 0 }
 0x2e4   : > { %725 = vmatpush.bf16.xpose.msrb.mxu0 %v716_v42 }
 0x2eb   : > { %1096 = vmatmul.msk.bf16.vlgmr.msrb.gmra.mxu0 %vm512_vm9, %v706_v43 }
 0x34e   : > { %v528_v13 = vpop.f32.mrf.mxu1 }
 0x34f   : > { %v529_v14 = vadd.f32 %v528_v13, %v474_v12 }
 0x351   : > { %v532_v15 = vsel %vm512_vm9, %v529_v14, -inf }
 0x352   : > { %533 = vmax.xlane.f32.xlu0 %v532_v15 }
 0x356   : > { %v530_v16 = vpop.f32.mrf.mxu1  ;;  %v628_v17 = vpop.f32.mrf.mxu3 }
 0x357   : > { %v629_v18 = vadd.f32 %v628_v17, %v474_v12 }
 0x359   : > { %v632_v19 = vsel %vm512_vm9, %v629_v18, -inf }
 0x35a   : > { %633 = vmax.xlane.f32.xlu1 %v632_v19 }
 0x35e   : > { %v630_v20 = vpop.f32.mrf.mxu3 }
 0x366   : > { %v823_v21 = vpop.f32.mrf.mxu3 }
 0x367   : > { %v824_v22 = vadd.f32 %v823_v21, %v474_v12 }
 0x368   : > { %v727_v23 = vpop.f32.mrf.mxu0 }
 0x369   : > { %v728_v24 = vadd.f32 %v727_v23, %v474_v12  ;;  %v827_v25 = vsel %vm512_vm9, %v824_v22, -inf }
 0x36a   : > { %828 = vmax.xlane.f32.xlu2 %v827_v25 }
 0x36b   : > { %v731_v27 = vsel %vm512_vm9, %v728_v24, -inf }
 0x36c   : > { %732 = vmax.xlane.f32.xlu0 %v731_v27  ;;  %v1116_v27 = vld [vmem:[#allocation8 + $0x8] sm:$0xff] }
 0x36d   : > { %897 = vmatpush.bf16.msra.mxu0 %v1116_v27 }
 0x36e   : > { %v825_v29 = vpop.f32.mrf.mxu3 }
 0x370   : > { %v729_v30 = vpop.f32.mrf.mxu0 }
 0x371   : > { %898 = vmatpush.bf16.msra.mxu0 %v1115_v28 }
 0x373   : > { %548 = vrot.lane.b32.xlu1 %v547_v31, %s1518_s19 }
 0x37b   : > { %839 = vrot.lane.b32.xlu1 %v547_v31, %s1503_s24 }
 0x3c5   : > { %v534_v32 = vpop.xlane.xlu0 %533 }
 0x3c6   : > { %v535_v33 = vsub.f32 %v529_v14, %v534_v32  ;;  %v1233_v32 = vld [vmem:[%s1857_s3] ss:$0 sm:$0xff] }
 0x3c8   : > { %v536_v34 = vmul.f32 1.442695, %v535_v33 }
 0x3ca   : > { %1241 = vpow2.f32 %v536_v34 }
 0x3cd   : > { %v634_v39 = vpop.xlane.xlu1 %633 }
 0x3ce   : > { %v635_v40 = vsub.f32 %v629_v18, %v634_v39 }
 0x3d0   : > { %v1242_v35 = vpop.eup %1241  ;;  %v636_v46 = vmul.f32 1.442695, %v635_v40 }
 0x3d1   : > { %v538_v36 = vsel %vm512_vm9, %v1242_v35, 0.0 }
 0x3d2   : > { %539 = vadd.xlane.f32.xlu2 %v538_v36 }
 0x3dd   : > { %v829_v48 = vpop.xlane.xlu2 %828 }
 0x3de   : > { %v830_v50 = vsub.f32 %v824_v22, %v829_v48 }
 0x3df   : > { %v733_v37 = vpop.xlane.xlu0 %732 }
 0x3e0   : > { %v734_v38 = vsub.f32 %v728_v24, %v733_v37  ;;  %v831_v52 = vmul.f32 1.442695, %v830_v50 }
 0x3e2   : > { %v735_v44 = vmul.f32 1.442695, %v734_v38 }
 0x3e4   : > { %1243 = vpow2.f32 %v735_v44 }
 0x3e5   : > { %v549_v45 = vpop.permute.xlu1 %548  ;;  %1245 = vpow2.f32 %v636_v46 }
 0x3e6   : > { %v555_v47 = vsel %vm553_vm11, %v549_v45, 0  ;;  %1247 = vpow2.f32 %v831_v52 }
 0x3e7   : > { %564 = vmatpush.bf16.msra.mxu2 %v555_v47 }
 0x3ea   : > { %v1244_v49 = vpop.eup %1243  ;;  %644 = vrot.lane.b32.xlu2 %v547_v31, %s1507_s6 }
 0x3eb   : > { %v737_v51 = vsel %vm512_vm9, %v1244_v49, 0.0  ;;  %v1246_v53 = vpop.eup %1245 }
 0x3ec   : > { %738 = vadd.xlane.f32.xlu0 %v737_v51  ;;  %v638_v54 = vsel %vm512_vm9, %v1246_v53, 0.0  ;;  %v1248_v55 = vpop.eup %1247 }
 0x3ed   : > { %v833_v56 = vsel %vm512_vm9, %v1248_v55, 0.0  ;;  %v840_v61 = vpop.permute.xlu1 %839 }
 0x3ee   : > { %v845_v1 = vsel %vm553_vm11, %v840_v61, 0 }
 0x3f4   : > { %639 = vadd.xlane.f32.xlu0 %v638_v54 }
 0x3fc   : > { %834 = vadd.xlane.f32.xlu0 %v833_v56 }
 0x410   : > { %743 = vrot.lane.b32.xlu0 %v547_v31, %s1506_s1 }
 0x445   : > { %v540_v57 = vpop.xlane.xlu2 %539 }
 0x446   : > { %1249 = vrcp.f32 %v540_v57 }
 0x44c   : > { %v1250_v58 = vpop.eup %1249 }
 0x44d   : > { %v645_v59 = vpop.permute.xlu2 %644  ;;  %v542_v60 = vmul.f32 %v1250_v58, %v1242_v35 }
 0x44e   : > { %v650_v62 = vsel %vm553_vm11, %v645_v59, 0 }
 0x44f   : > { %659 = vmatpush.bf16.msrb.mxu2 %v650_v62  ;;  %v543_v63 = vpack.c.bf16 %v542_v60, %v542_v60  ;;  %v1234_v62 = vld [vmem:[%s1859_s5] ss:$0 sm:$0xff] }
 0x451   : > { %1093 = vmatmul.msk.bf16.vlgmr.msra.gmra.mxu2 %vm512_vm9, %v543_v63 }
 0x453   : > { %854 = vmatpush.bf16.msra.mxu2 %v845_v1 }
 0x45f   : > { %v739_v2 = vpop.xlane.xlu0 %738 }
 0x467   : > { %v640_v3 = vpop.xlane.xlu0 %639 }
 0x468   : > { %1251 = vrcp.f32 %v640_v3 }
 0x46e   : > { %v1252_v4 = vpop.eup %1251 }
 0x46f   : > { %v642_v5 = vmul.f32 %v1252_v4, %v1246_v53  ;;  %v835_v6 = vpop.xlane.xlu0 %834 }
 0x470   : > { %1253 = vrcp.f32 %v835_v6 }
 0x471   : > { %v643_v7 = vpack.c.bf16 %v642_v5, %v642_v5  ;;  %1255 = vrcp.f32 %v739_v2 }
 0x473   : > { %1095 = vmatmul.msk.bf16.vlgmr.msrb.gmra.mxu2 %vm512_vm9, %v643_v7 }
 0x476   : > { %v1254_v42 = vpop.eup %1253 }
 0x477   : > { %v837_v43 = vmul.f32 %v1254_v42, %v1248_v55  ;;  %v1256_v8 = vpop.eup %1255 }
 0x478   : > { %v741_v41 = vmul.f32 %v1256_v8, %v1244_v49 }
 0x479   : > { %v838_v9 = vpack.c.bf16 %v837_v43, %v837_v43 }
 0x47a   : > { %v742_v13 = vpack.c.bf16 %v741_v41, %v741_v41 }
 0x482   : > { %v744_v10 = vpop.permute.xlu0 %743 }
 0x483   : > { %1099 = vmatmul.msk.bf16.vlgmr.msra.gmra.mxu2 %vm512_vm9, %v838_v9  ;;  %v749_v12 = vsel %vm553_vm11, %v744_v10, 0 }
 0x484   : > { %758 = vmatpush.bf16.msrb.mxu1 %v749_v12 }
 0x487   : > { %1097 = vmatmul.msk.bf16.vlgmr.msrb.gmra.mxu1 %vm512_vm9, %v742_v13 }
 0x4d4   : > { %v566_v14 = vpop.f32.mrf.mxu2 }
 0x4d5   : > { %v570_v15 = vpack.c.bf16 %v566_v14, %v566_v14 }
 0x4d7   : > { %572 = vst.msk [vmem:[#allocation2] sm:$0xf] %vm571_vm12, %v570_v15 }
 0x4dc   : > { %v568_v16 = vpop.f32.mrf.mxu2 }
 0x4f6   : > { %v661_v17 = vpop.f32.mrf.mxu2 }
 0x4f7   : > { %v665_v18 = vpack.c.bf16 %v661_v17, %v661_v17 }
 0x4f9   : > { %667 = vrot.lane.b32.xlu2 %v665_v18, %s1504_s15 }
 0x4fe   : > { %v663_v19 = vpop.f32.mrf.mxu2 }
 0x504   : > { %v760_v20 = vpop.f32.mrf.mxu1 }
 0x505   : > { %v764_v21 = vpack.c.bf16 %v760_v20, %v760_v20 }
 0x506   : > { %v856_v22 = vpop.f32.mrf.mxu2 }
 0x507   : > { %v860_v23 = vpack.c.bf16 %v856_v22, %v856_v22  ;;  %766 = vrot.lane.b32.xlu1 %v764_v21, %s1508_s13 }
 0x509   : > { %862 = vrot.lane.b32.xlu2 %v860_v23, %s1505_s2  ;;  %s1110_s2 = sshll.u32 %s1588_s12, 3  ;;  %s384_s12 = scalar_lea.vmem [#allocation12], %s1077_s11 }
 0x50a   : > { %s954_s13 = scalar_lea.hbm %s1862_s8, %s1110_s2  ;;  %s956_s18 = sshll.u32 %s384_s12, 4  ;;  %s957_s18 = int_to_ptr.vmem [resolvable:$true] %s956_s18 }
 0x50b   : > { %s958_s10 = sshll.u32 %s954_s13, 4  ;;  %s1431_s11 = scalar_lea.hbm %s1862_s8, 16  ;;  %s959_s10 = int_to_ptr.hbm [resolvable:$true] %s958_s10 }
 0x50c   : > { %v762_v24 = vpop.f32.mrf.mxu1  ;;  %s1425_s16 = sshra.s32 %s959_s10, 4  ;;  %s1426_s16 = int_to_ptr.hbm [resolvable:$true] %s1425_s16 }
 0x50d   : > { %s1427_s17 = scalar_lea.hbm %s1426_s16, 8  ;;  %p1432_p12 = scmp.lt.s32.totalorder %s1426_s16, %s1862_s8 }
 0x50e   : > { %v858_v25 = vpop.f32.mrf.mxu2  ;;  %p1428_p1 = scmp.ne.s32.totalorder %s1426_s16, %s1427_s17  ;;  %p1433_p7 = scmp.lt.s32.totalorder %s1431_s11, %s1427_s17 }
 0x510   : > { %p1429_p3 = pnand %p1428_p1, %p1651_p4  ;;  %p1434_p8 = por %p1433_p7, %p1432_p12 }
 0x512   : > { %p1430_p5 = pneg %p1429_p3 }
 0x514   : > { %p1435_p9 = pnand %p1434_p8, %p1430_p5 }
 0x553   : > { %v668_v26 = vpop.permute.xlu2 %667 }
 0x554   : > { %671 = vst.msk [vmem:[#allocation2] sm:$0xf] %vm670_vm13, %v668_v26 }
 0x563   : > { %v863_v30 = vpop.permute.xlu2 %862 }
 0x579   : > { %v767_v29 = vpop.permute.xlu1 %766 }
 0x57a   : > { %770 = vst.msk [vmem:[#allocation2] sm:$0xf] %vm769_vm14, %v767_v29 }
 0x57b   : > { %866 = vst.msk [vmem:[#allocation2] sm:$0xf] %vm865_vm15, %v863_v30 }
 0x582   : > { %v867_v31 = vld [vmem:[#allocation2] sm:$0xf] }
 0x583   : > { %1108 = vmatmul.msk.bf16.vlgmr.msra.gmra.mxu0 %vm390_vm0, %v867_v31 }
 0x600   : > { %v900_v33 = vpop.f32.mrf.mxu0 }
 0x601   : > { %v901_v34 = vadd.f32 %v1233_v32, %v900_v33 }
 0x603   : > { %v904_v35 = vadd.f32 %v901_v34, %v1700_v0 }
 0x605   : > { %v905_v36 = vmul.f32 %v904_v35, %v904_v35 }
 0x607   : > { %v906_v39 = vsel %vm390_vm0, %v905_v36, 0.0 }
 0x608   : > { %v902_v37 = vpop.f32.mrf.mxu0  ;;  %907 = vadd.xlane.f32.xlu1 %v906_v39 }
 0x67b   : > { %v908_v38 = vpop.xlane.xlu1 %907 }
 0x67c   : > { %v909_v40 = vmul.f32 %v908_v38, %v1705_v11 }
 0x67e   : > { %v910_v44 = vadd.f32 1e-07, %v909_v40 }
 0x680   : > { %1257 = vrsqrt.f32 %v910_v44  ;;  %vm918_vm1 = vcmp.eq.f32.partialorder %v910_v44, inf  ;;  %v921_v0 = vand.u32 2147483648, %v910_v44  ;;  %vm920_vm2 = vcmp.eq.f32.partialorder %v910_v44, 0.0 }
 0x686   : > { %v1258_v45 = vpop.eup %1257 }
 0x687   : > { %v912_v46 = vmul.f32 %v1258_v45, %v910_v44 }
 0x689   : > { %v913_v47 = vmul.f32 %v1258_v45, %v912_v46 }
 0x68b   : > { %v914_v48 = vmul.f32 0.5, %v913_v47 }
 0x68d   : > { %v915_v49 = vsub.f32 1.5, %v914_v48 }
 0x68f   : > { %v916_v50 = vmul.f32 %v1258_v45, %v915_v49 }
 0x691   : > { %v917_v51 = vmul.f32 %v916_v50, %v910_v44 }
 0x693   : > { %v919_v52 = vsel %vm918_vm1, %v910_v44, %v917_v51 }
 0x694   : > { %v922_v53 = vsel %vm920_vm2, %v921_v0, %v919_v52 }
 0x695   : > { %1259 = vrcp.f32 %v922_v53  ;;  %v934_v56 = vand.u32 2147483648, %v922_v53  ;;  %v932_v58 = vand.u32 2147483647, %v922_v53  ;;  %vm928_vm4 = vweird.f32 %v922_v53 }
 0x697   : > { %v935_v60 = vor.u32 1.1754944e-38, %v934_v56  ;;  %vm933_vm6 = vcmp.eq.f32.partialorder %v932_v58, 8.507059e+37 }
 0x69b   : > { %v1260_v54 = vpop.eup %1259 }
 0x69c   : > { %v924_v55 = vmul.f32 %v1260_v54, %v922_v53  ;;  %vm929_vm3 = vweird.f32 %v1260_v54 }
 0x69d   : > { %vm930_vm5 = vmor %vm928_vm4, %vm929_vm3 }
 0x69e   : > { %v925_v11 = vsub.f32 1.0, %v924_v55 }
 0x6a0   : > { %v926_v57 = vmul.f32 %v1260_v54, %v925_v11 }
 0x6a2   : > { %v927_v59 = vadd.f32 %v1260_v54, %v926_v57 }
 0x6a4   : > { %v931_v61 = vsel %vm930_vm5, %v1260_v54, %v927_v59 }
 0x6a5   : > { %v936_v63 = vsel %vm933_vm6, %v935_v60, %v931_v61 }
 0x6a6   : > { %v937_v1 = vmul.f32 %v936_v63, %v904_v35 }
 0x6a8   : > { %v941_v2 = vmul.f32 %v1234_v62, %v937_v1 }
 0x6aa   : > { %942 = vst.msk [vmem:[%s384_s12] sm:$0xff] %vm390_vm0, %v941_v2 }
 0x6ab   : > { %1438 = shalt.err (!%p1435_p9)
}
 0x6ac   : > { %1135 = dma.vmem_to_hbm [thread:$0]  (%p1651_p4), %s957_s18, 128, %s959_s10, %s944_s14  }
 0x6ad PF: > { %s970_s25 = sand.u32 1, %s1473_s27   ;;  %p1876_p10 = scmp.ge.s32.totalorder %s1485_s30, 2 }
 0x6ae   : > { %s971_s1 = scalar_lea.sflag [#allocation5], %s970_s25 }
 0x6af   : > { %p1155_p13 = pnand %p1876_p10, %p1655_p6 }
 0x6b1   : > { %p1156_p11 = pneg %p1155_p13 }
 0x6b3   : > { %1468 = dma.done.wait (%p1156_p11), %s971_s1, 128  }
 0x6b4   : > { %1470 = vsyncadd (%p1156_p11), %s971_s1, 4294967168  ;;  %p23_p0 = scmp.ge.s32.totalorder %s1625_s20, 4   ;;  %s1877_s27 = smov %s1477_s28 }
 0x6b5   : > { %s1878_s28 = smov %s1481_s29  ;;  %s1879_s29 = smov %s1636_s22 }
 0x6b6   : > { %s1880_s30 = smov %s1625_s20  ;;  %25 = sbr.rel (!%p23_p0) target bundleno = 11 (0xb), region = 113 }
 0x6bb   :  { %977 = vsyncpa [#allocation4], 1 }
 0x6bc   :  { %979 = vsyncpa [#allocation4 + $0x1], 1 }
 0x6bd   :  { %980 = vsyncpa [#allocation7], 1 }
 0x6be   :  { %981 = vsyncpa [#allocation10], 1 }
 0x6bf   :  { %982 = vsyncpa [#allocation5], 1 }
 0x6c0   :  { %984 = vsyncpa [#allocation5 + $0x1], 1 }

</bundles_post_ra>
